<compile_context>
chip_gen: v6e
topology: v6e:2x2x1
jax: 0.10.0
libtpu: 0.0.40
codegen_flags: <defaults>
</compile_context>

<pallas_src>
import jax
import jax.numpy as jnp
from jax.experimental import pallas as pl
from jax.experimental.pallas import tpu as pltpu


def upsample_conv_forward(x_nchw, w_t, bias, gamma, beta, *, eps=1e-5):
    """Equivalent of UpSampleConv.forward (batchnorm=True, dropout=False), NCHW in/out."""
    del bias  # cancelled exactly by train-mode BN mean subtraction

    N, Cin, H, W = x_nchw.shape
    Cout = w_t.shape[1]
    kH, kW, sW = 3, 4, 2                     # fixed by the module (padding hard-coded to (1,1))
    taps_w = kW // sW                        # 2 width taps per output-column parity
    Hout, Wout = H, sW * W                   # (H-1)*1 - 2 + 3 ,  (W-1)*2 - 2 + 4
    HW = Hout * W                            # output rows per parity per image
    COUT_PAD = 128 * pl.cdiv(Cout, 128)      # lane-dense channel padding (sliced off at the end)
    n_w = sW * kH * taps_w                   # 12 sub-pixel weight slabs

    # -------- tiny wrapper-side glue: NHWC + 1-px halo; flipped, sub-pixel-selected weights ----
    x = jnp.transpose(x_nchw, (0, 2, 3, 1)).astype(jnp.float32)       # NHWC
    xp = jnp.pad(x, ((0, 0), (1, 1), (1, 1), (0, 0)))                 # (N, H+2, W+2, Cin)
    # Flipped forward-conv weight: Wf[kh, kw, ci, co] = w_t[ci, co, kH-1-kh, kW-1-kw]
    w_f = jnp.transpose(w_t[:, :, ::-1, ::-1], (2, 3, 0, 1)).astype(jnp.float32)
    # Wsel[(p*kH + kh)*taps_w + t] = Wf[kh, p + sW*t]  -- only the taps that hit real data
    w_taps = [w_f[kh, p + sW * t]
              for p in range(sW) for kh in range(kH) for t in range(taps_w)]
    Wsel = jnp.stack(w_taps, axis=0)                                  # (12, Cin, Cout)
    Wsel = jnp.pad(Wsel, ((0, 0), (0, 0), (0, COUT_PAD - Cout))).astype(jnp.bfloat16)

    def kernel(x_ref, w_ref, out_ref, stats_ref):
        # x_ref:     (1, H+2, W+2, Cin) f32      haloed image for this batch element
        # w_ref:     (12, Cin, COUT_PAD) bf16    VMEM-resident sub-pixel weight slabs
        # out_ref:   (1, HW, 2*COUT_PAD) f32     lanes = [parity-0 channels | parity-1 channels]
        # stats_ref: (1, 2, COUT_PAD)   f32      rows  = [sum, sum of squares] (both parities)
        # Hoist the 9 shifted (kh, dw) input slabs once; cast to bf16 for the MXU.
        slabs = [[x_ref[0, kh:kh + Hout, dw:dw + W, :]
                  .reshape(HW, Cin).astype(jnp.bfloat16)
                  for dw in range(sW - 1 + taps_w)]                   # dw = parity + t in {0,1,2}
                 for kh in range(kH)]

        s_tot = jnp.zeros((1, COUT_PAD), jnp.float32)
        q_tot = jnp.zeros((1, COUT_PAD), jnp.float32)
        for p in range(sW):                                           # output-column parity
            acc = jnp.zeros((HW, COUT_PAD), jnp.float32)
            for kh in range(kH):
                for t in range(taps_w):
                    w_pt = w_ref[(p * kH + kh) * taps_w + t]          # (Cin, COUT_PAD) bf16
                    acc = acc + jnp.dot(slabs[kh][p + t], w_pt,
                                        preferred_element_type=jnp.float32)
            # lane-aligned (multiple-of-128) full-width store; parity sits in the lane dim
            out_ref[0, :, p * COUT_PAD:(p + 1) * COUT_PAD] = acc
            # BN sufficient statistics reduced from the f32 accumulator (exact)
            s_tot = s_tot + jnp.sum(acc, axis=0, keepdims=True)
            q_tot = q_tot + jnp.sum(acc * acc, axis=0, keepdims=True)
        stats_ref[0, 0:1, :] = s_tot
        stats_ref[0, 1:2, :] = q_tot

    flops = 2 * N * sW * kH * taps_w * HW * Cin * COUT_PAD
    bytes_accessed = (xp.size * 4 + Wsel.size * 2
                      + N * HW * 2 * COUT_PAD * 4 + N * 2 * COUT_PAD * 4)

    out, stats = pl.pallas_call(
        kernel,
        grid=(N,),                                   # one image per step; megacore splits batch
        in_specs=[
            pl.BlockSpec((1, H + 2, W + 2, Cin), lambda n: (n, 0, 0, 0)),
            pl.BlockSpec((n_w, Cin, COUT_PAD), lambda n: (0, 0, 0)),   # weights stay resident
        ],
        out_specs=[
            pl.BlockSpec((1, HW, 2 * COUT_PAD), lambda n: (n, 0, 0)),
            pl.BlockSpec((1, 2, COUT_PAD), lambda n: (n, 0, 0)),
        ],
        out_shape=(
            jax.ShapeDtypeStruct((N, HW, 2 * COUT_PAD), jnp.float32),
            jax.ShapeDtypeStruct((N, 2, COUT_PAD), jnp.float32),
        ),
        compiler_params=pltpu.CompilerParams(
            dimension_semantics=("parallel",),
            # <= ~48 MiB keeps v7x (64 MiB physical VMEM) safe with double-buffering; on
            # v5e/v6e (128 MiB) this can be raised for larger per-step blocks.
            vmem_limit_bytes=48 * 1024 * 1024),
        cost_estimate=pl.CostEstimate(flops=flops, transcendentals=0,
                                      bytes_accessed=bytes_accessed),
    )(xp, Wsel)

    # -------- BN folded into one per-channel FMA, applied in plain JAX so XLA fuses it --------
    # -------- with the un-pad / parity-interleave / NCHW transpose (single epilogue pass) -----
    count = float(N * Hout * Wout)                   # padded channels are all-zero -> harmless
    sums = jnp.sum(stats[:, 0, :], axis=0)
    sumsq = jnp.sum(stats[:, 1, :], axis=0)
    mean = sums / count
    # f32 difference-of-squares variance; fine for conv outputs (|mean| << std * 1e3), clamped.
    var = jnp.maximum(sumsq / count - mean * mean, 0.0)
    gamma_p = jnp.pad(gamma.astype(jnp.float32), (0, COUT_PAD - Cout))
    beta_p = jnp.pad(beta.astype(jnp.float32), (0, COUT_PAD - Cout))
    scale = gamma_p * jax.lax.rsqrt(var + eps)
    shift = beta_p - mean * scale
    scale2 = jnp.concatenate([scale, scale])         # lane layout: [parity0 | parity1] channels
    shift2 = jnp.concatenate([shift, shift])

    y = out * scale2 + shift2                        # single fused FMA
    y = y.reshape(N, Hout, W, sW, COUT_PAD)[..., :Cout]
    y = y.reshape(N, Hout, Wout, Cout)               # wo = sW*u + parity  (free interleave)
    return jnp.transpose(y, (0, 3, 1, 2))            # NCHW to match the PyTorch module


def _reference(x_nchw, w_t, bias, gamma, beta, eps=1e-5):
    """Plain-JAX reference: ConvTranspose2d(k=(3,4), s=(1,2), p=(1,1)) + bias + train-mode BN."""
    w_flip = jnp.transpose(w_t[:, :, ::-1, ::-1], (1, 0, 2, 3))   # (Cout, Cin, kH, kW)
    y = jax.lax.conv_general_dilated(
        x_nchw.astype(jnp.float32), w_flip.astype(jnp.float32),
        window_strides=(1, 1), padding=((1, 1), (2, 2)),
        lhs_dilation=(1, 2),
        dimension_numbers=('NCHW', 'OIHW', 'NCHW'))
    y = y + bias.reshape(1, -1, 1, 1)
    mean = y.mean(axis=(0, 2, 3), keepdims=True)
    var = ((y - mean) ** 2).mean(axis=(0, 2, 3), keepdims=True)
    return (y - mean) * jax.lax.rsqrt(var + eps) * gamma.reshape(1, -1, 1, 1) \
        + beta.reshape(1, -1, 1, 1)


if __name__ == "__main__":
    key = jax.random.PRNGKey(0)
    k_x, k_w, k_b, k_g, k_be = jax.random.split(key, 5)

    N, Cin, Cout, H, W = 2, 4, 4, 16, 16
    kH, kW = 3, 4

    x = jax.random.normal(k_x, (N, Cin, H, W), dtype=jnp.float32)
    # ConvTranspose2d weight layout: (Cin, Cout, kH, kW)
    w_t = 0.1 * jax.random.normal(k_w, (Cin, Cout, kH, kW), dtype=jnp.float32)
    bias = 0.1 * jax.random.normal(k_b, (Cout,), dtype=jnp.float32)
    gamma = 1.0 + 0.1 * jax.random.normal(k_g, (Cout,), dtype=jnp.float32)
    beta = 0.1 * jax.random.normal(k_be, (Cout,), dtype=jnp.float32)

    out = jax.block_until_ready(upsample_conv_forward(x, w_t, bias, gamma, beta))
    assert out.shape == (N, Cout, H, 2 * W), out.shape     # height kept, width doubled

    ref = jax.block_until_ready(_reference(x, w_t, bias, gamma, beta))
    max_err = float(jnp.max(jnp.abs(out - ref)))
    # Precision contract: bf16 MXU inputs with f32 accumulation vs an f32 reference
    # (module spec is f64) -> expect ~1e-2 max abs error on unit-variance BN outputs.
    assert jnp.allclose(out, ref, rtol=3e-2, atol=3e-2), max_err

    print("KERNEL_OK")
</pallas_src>

<mosaic_0001>
module attributes {stable_mosaic.version = 11 : i64} {
  func.func @kernel(%arg0: i32, %arg1: memref<1x18x18x4xf32, #tpu.memory_space<vmem>>, %arg2: memref<12x4x128xbf16, #tpu.memory_space<vmem>>, %arg3: memref<1x256x256xf32, #tpu.memory_space<vmem>>, %arg4: memref<1x2x128xf32, #tpu.memory_space<vmem>>) attributes {dimension_semantics = [#tpu.dimension_semantics<parallel>], iteration_bounds = array<i64: 2>, scalar_prefetch = 0 : i64, scratch_operands = 0 : i64, tpu.core_type = #tpu.core_type<tc>, window_params = [{transform_indices = @transform_0, window_bounds = array<i64: 1, 18, 18, 4>}, {pipeline_mode = #tpu.pipeline_mode<synchronous>, transform_indices = @transform_1, window_bounds = array<i64: 12, 4, 128>}, {transform_indices = @transform_2, window_bounds = array<i64: 1, 256, 256>}, {transform_indices = @transform_3, window_bounds = array<i64: 1, 2, 128>}]} {
    %c0 = arith.constant 0 : index
    %c0_0 = arith.constant 0 : index
    %c0_1 = arith.constant 0 : index
    %c0_2 = arith.constant 0 : index
    %0 = vector.load %arg1[%c0, %c0_0, %c0_1, %c0_2] : memref<1x18x18x4xf32, #tpu.memory_space<vmem>>, vector<1x16x16x4xf32>
    %1 = vector.shape_cast %0 : vector<1x16x16x4xf32> to vector<16x16x4xf32>
    %2 = vector.shape_cast %1 : vector<16x16x4xf32> to vector<256x4xf32>
    %3 = arith.truncf %2 : vector<256x4xf32> to vector<256x4xbf16>
    %c0_3 = arith.constant 0 : index
    %c0_4 = arith.constant 0 : index
    %c1 = arith.constant 1 : index
    %c0_5 = arith.constant 0 : index
    %4 = vector.load %arg1[%c0_3, %c0_4, %c1, %c0_5] : memref<1x18x18x4xf32, #tpu.memory_space<vmem>>, vector<1x16x16x4xf32>
    %5 = vector.shape_cast %4 : vector<1x16x16x4xf32> to vector<16x16x4xf32>
    %6 = vector.shape_cast %5 : vector<16x16x4xf32> to vector<256x4xf32>
    %7 = arith.truncf %6 : vector<256x4xf32> to vector<256x4xbf16>
    %c0_6 = arith.constant 0 : index
    %c0_7 = arith.constant 0 : index
    %c2 = arith.constant 2 : index
    %c0_8 = arith.constant 0 : index
    %8 = vector.load %arg1[%c0_6, %c0_7, %c2, %c0_8] : memref<1x18x18x4xf32, #tpu.memory_space<vmem>>, vector<1x16x16x4xf32>
    %9 = vector.shape_cast %8 : vector<1x16x16x4xf32> to vector<16x16x4xf32>
    %10 = vector.shape_cast %9 : vector<16x16x4xf32> to vector<256x4xf32>
    %11 = arith.truncf %10 : vector<256x4xf32> to vector<256x4xbf16>
    %c0_9 = arith.constant 0 : index
    %c1_10 = arith.constant 1 : index
    %c0_11 = arith.constant 0 : index
    %c0_12 = arith.constant 0 : index
    %12 = vector.load %arg1[%c0_9, %c1_10, %c0_11, %c0_12] : memref<1x18x18x4xf32, #tpu.memory_space<vmem>>, vector<1x16x16x4xf32>
    %13 = vector.shape_cast %12 : vector<1x16x16x4xf32> to vector<16x16x4xf32>
    %14 = vector.shape_cast %13 : vector<16x16x4xf32> to vector<256x4xf32>
    %15 = arith.truncf %14 : vector<256x4xf32> to vector<256x4xbf16>
    %c0_13 = arith.constant 0 : index
    %c1_14 = arith.constant 1 : index
    %c1_15 = arith.constant 1 : index
    %c0_16 = arith.constant 0 : index
    %16 = vector.load %arg1[%c0_13, %c1_14, %c1_15, %c0_16] : memref<1x18x18x4xf32, #tpu.memory_space<vmem>>, vector<1x16x16x4xf32>
    %17 = vector.shape_cast %16 : vector<1x16x16x4xf32> to vector<16x16x4xf32>
    %18 = vector.shape_cast %17 : vector<16x16x4xf32> to vector<256x4xf32>
    %19 = arith.truncf %18 : vector<256x4xf32> to vector<256x4xbf16>
    %c0_17 = arith.constant 0 : index
    %c1_18 = arith.constant 1 : index
    %c2_19 = arith.constant 2 : index
    %c0_20 = arith.constant 0 : index
    %20 = vector.load %arg1[%c0_17, %c1_18, %c2_19, %c0_20] : memref<1x18x18x4xf32, #tpu.memory_space<vmem>>, vector<1x16x16x4xf32>
    %21 = vector.shape_cast %20 : vector<1x16x16x4xf32> to vector<16x16x4xf32>
    %22 = vector.shape_cast %21 : vector<16x16x4xf32> to vector<256x4xf32>
    %23 = arith.truncf %22 : vector<256x4xf32> to vector<256x4xbf16>
    %c0_21 = arith.constant 0 : index
    %c2_22 = arith.constant 2 : index
    %c0_23 = arith.constant 0 : index
    %c0_24 = arith.constant 0 : index
    %24 = vector.load %arg1[%c0_21, %c2_22, %c0_23, %c0_24] : memref<1x18x18x4xf32, #tpu.memory_space<vmem>>, vector<1x16x16x4xf32>
    %25 = vector.shape_cast %24 : vector<1x16x16x4xf32> to vector<16x16x4xf32>
    %26 = vector.shape_cast %25 : vector<16x16x4xf32> to vector<256x4xf32>
    %27 = arith.truncf %26 : vector<256x4xf32> to vector<256x4xbf16>
    %c0_25 = arith.constant 0 : index
    %c2_26 = arith.constant 2 : index
    %c1_27 = arith.constant 1 : index
    %c0_28 = arith.constant 0 : index
    %28 = vector.load %arg1[%c0_25, %c2_26, %c1_27, %c0_28] : memref<1x18x18x4xf32, #tpu.memory_space<vmem>>, vector<1x16x16x4xf32>
    %29 = vector.shape_cast %28 : vector<1x16x16x4xf32> to vector<16x16x4xf32>
    %30 = vector.shape_cast %29 : vector<16x16x4xf32> to vector<256x4xf32>
    %31 = arith.truncf %30 : vector<256x4xf32> to vector<256x4xbf16>
    %c0_29 = arith.constant 0 : index
    %c2_30 = arith.constant 2 : index
    %c2_31 = arith.constant 2 : index
    %c0_32 = arith.constant 0 : index
    %32 = vector.load %arg1[%c0_29, %c2_30, %c2_31, %c0_32] : memref<1x18x18x4xf32, #tpu.memory_space<vmem>>, vector<1x16x16x4xf32>
    %33 = vector.shape_cast %32 : vector<1x16x16x4xf32> to vector<16x16x4xf32>
    %34 = vector.shape_cast %33 : vector<16x16x4xf32> to vector<256x4xf32>
    %35 = arith.truncf %34 : vector<256x4xf32> to vector<256x4xbf16>
    %cst = arith.constant 0.000000e+00 : f32
    %36 = vector.broadcast %cst : f32 to vector<1x128xf32>
    %cst_33 = arith.constant 0.000000e+00 : f32
    %37 = vector.broadcast %cst_33 : f32 to vector<1x128xf32>
    %cst_34 = arith.constant 0.000000e+00 : f32
    %38 = vector.broadcast %cst_34 : f32 to vector<256x128xf32>
    %c0_35 = arith.constant 0 : index
    %c0_36 = arith.constant 0 : index
    %c0_37 = arith.constant 0 : index
    %39 = vector.load %arg2[%c0_35, %c0_36, %c0_37] : memref<12x4x128xbf16, #tpu.memory_space<vmem>>, vector<1x4x128xbf16>
    %40 = vector.shape_cast %39 : vector<1x4x128xbf16> to vector<4x128xbf16>
    %cst_38 = arith.constant dense<0.000000e+00> : vector<256x128xf32>
    %41 = tpu.matmul %3, %40, %cst_38 {dimension_numbers = #tpu.dot_dimension_numbers<[1], [0], [0], [1], [0, 0, 1, 1], [], []>} : vector<256x4xbf16>, vector<4x128xbf16>, vector<256x128xf32> -> vector<256x128xf32>
    %42 = arith.addf %38, %41 : vector<256x128xf32>
    %c1_39 = arith.constant 1 : index
    %c0_40 = arith.constant 0 : index
    %c0_41 = arith.constant 0 : index
    %43 = vector.load %arg2[%c1_39, %c0_40, %c0_41] : memref<12x4x128xbf16, #tpu.memory_space<vmem>>, vector<1x4x128xbf16>
    %44 = vector.shape_cast %43 : vector<1x4x128xbf16> to vector<4x128xbf16>
    %cst_42 = arith.constant dense<0.000000e+00> : vector<256x128xf32>
    %45 = tpu.matmul %7, %44, %cst_42 {dimension_numbers = #tpu.dot_dimension_numbers<[1], [0], [0], [1], [0, 0, 1, 1], [], []>} : vector<256x4xbf16>, vector<4x128xbf16>, vector<256x128xf32> -> vector<256x128xf32>
    %46 = arith.addf %42, %45 : vector<256x128xf32>
    %c2_43 = arith.constant 2 : index
    %c0_44 = arith.constant 0 : index
    %c0_45 = arith.constant 0 : index
    %47 = vector.load %arg2[%c2_43, %c0_44, %c0_45] : memref<12x4x128xbf16, #tpu.memory_space<vmem>>, vector<1x4x128xbf16>
    %48 = vector.shape_cast %47 : vector<1x4x128xbf16> to vector<4x128xbf16>
    %cst_46 = arith.constant dense<0.000000e+00> : vector<256x128xf32>
    %49 = tpu.matmul %15, %48, %cst_46 {dimension_numbers = #tpu.dot_dimension_numbers<[1], [0], [0], [1], [0, 0, 1, 1], [], []>} : vector<256x4xbf16>, vector<4x128xbf16>, vector<256x128xf32> -> vector<256x128xf32>
    %50 = arith.addf %46, %49 : vector<256x128xf32>
    %c3 = arith.constant 3 : index
    %c0_47 = arith.constant 0 : index
    %c0_48 = arith.constant 0 : index
    %51 = vector.load %arg2[%c3, %c0_47, %c0_48] : memref<12x4x128xbf16, #tpu.memory_space<vmem>>, vector<1x4x128xbf16>
    %52 = vector.shape_cast %51 : vector<1x4x128xbf16> to vector<4x128xbf16>
    %cst_49 = arith.constant dense<0.000000e+00> : vector<256x128xf32>
    %53 = tpu.matmul %19, %52, %cst_49 {dimension_numbers = #tpu.dot_dimension_numbers<[1], [0], [0], [1], [0, 0, 1, 1], [], []>} : vector<256x4xbf16>, vector<4x128xbf16>, vector<256x128xf32> -> vector<256x128xf32>
    %54 = arith.addf %50, %53 : vector<256x128xf32>
    %c4 = arith.constant 4 : index
    %c0_50 = arith.constant 0 : index
    %c0_51 = arith.constant 0 : index
    %55 = vector.load %arg2[%c4, %c0_50, %c0_51] : memref<12x4x128xbf16, #tpu.memory_space<vmem>>, vector<1x4x128xbf16>
    %56 = vector.shape_cast %55 : vector<1x4x128xbf16> to vector<4x128xbf16>
    %cst_52 = arith.constant dense<0.000000e+00> : vector<256x128xf32>
    %57 = tpu.matmul %27, %56, %cst_52 {dimension_numbers = #tpu.dot_dimension_numbers<[1], [0], [0], [1], [0, 0, 1, 1], [], []>} : vector<256x4xbf16>, vector<4x128xbf16>, vector<256x128xf32> -> vector<256x128xf32>
    %58 = arith.addf %54, %57 : vector<256x128xf32>
    %c5 = arith.constant 5 : index
    %c0_53 = arith.constant 0 : index
    %c0_54 = arith.constant 0 : index
    %59 = vector.load %arg2[%c5, %c0_53, %c0_54] : memref<12x4x128xbf16, #tpu.memory_space<vmem>>, vector<1x4x128xbf16>
    %60 = vector.shape_cast %59 : vector<1x4x128xbf16> to vector<4x128xbf16>
    %cst_55 = arith.constant dense<0.000000e+00> : vector<256x128xf32>
    %61 = tpu.matmul %31, %60, %cst_55 {dimension_numbers = #tpu.dot_dimension_numbers<[1], [0], [0], [1], [0, 0, 1, 1], [], []>} : vector<256x4xbf16>, vector<4x128xbf16>, vector<256x128xf32> -> vector<256x128xf32>
    %62 = arith.addf %58, %61 : vector<256x128xf32>
    %c0_56 = arith.constant 0 : index
    %c0_57 = arith.constant 0 : index
    %c0_58 = arith.constant 0 : index
    %63 = vector.load %arg3[%c0_56, %c0_57, %c0_58] : memref<1x256x256xf32, #tpu.memory_space<vmem>>, vector<1x256x128xf32>
    %64 = vector.shape_cast %63 : vector<1x256x128xf32> to vector<256x128xf32>
    %65 = vector.shape_cast %62 : vector<256x128xf32> to vector<1x256x128xf32>
    tpu.vector_store %arg3[%c0_56, %c0_57, %c0_58], %65 {strides = array<i32>} : memref<1x256x256xf32, #tpu.memory_space<vmem>>, vector<1x256x128xf32>,
    %cst_59 = arith.constant dense<0.000000e+00> : vector<128xf32>
    %66 = vector.multi_reduction <add>, %62, %cst_59 [0] : vector<256x128xf32> to vector<128xf32>
    %67 = vector.shape_cast %66 : vector<128xf32> to vector<1x128xf32>
    %68 = arith.addf %36, %67 : vector<1x128xf32>
    %69 = arith.mulf %62, %62 : vector<256x128xf32>
    %cst_60 = arith.constant dense<0.000000e+00> : vector<128xf32>
    %70 = vector.multi_reduction <add>, %69, %cst_60 [0] : vector<256x128xf32> to vector<128xf32>
    %71 = vector.shape_cast %70 : vector<128xf32> to vector<1x128xf32>
    %72 = arith.addf %37, %71 : vector<1x128xf32>
    %cst_61 = arith.constant 0.000000e+00 : f32
    %73 = vector.broadcast %cst_61 : f32 to vector<256x128xf32>
    %c6 = arith.constant 6 : index
    %c0_62 = arith.constant 0 : index
    %c0_63 = arith.constant 0 : index
    %74 = vector.load %arg2[%c6, %c0_62, %c0_63] : memref<12x4x128xbf16, #tpu.memory_space<vmem>>, vector<1x4x128xbf16>
    %75 = vector.shape_cast %74 : vector<1x4x128xbf16> to vector<4x128xbf16>
    %cst_64 = arith.constant dense<0.000000e+00> : vector<256x128xf32>
    %76 = tpu.matmul %7, %75, %cst_64 {dimension_numbers = #tpu.dot_dimension_numbers<[1], [0], [0], [1], [0, 0, 1, 1], [], []>} : vector<256x4xbf16>, vector<4x128xbf16>, vector<256x128xf32> -> vector<256x128xf32>
    %77 = arith.addf %73, %76 : vector<256x128xf32>
    %c7 = arith.constant 7 : index
    %c0_65 = arith.constant 0 : index
    %c0_66 = arith.constant 0 : index
    %78 = vector.load %arg2[%c7, %c0_65, %c0_66] : memref<12x4x128xbf16, #tpu.memory_space<vmem>>, vector<1x4x128xbf16>
    %79 = vector.shape_cast %78 : vector<1x4x128xbf16> to vector<4x128xbf16>
    %cst_67 = arith.constant dense<0.000000e+00> : vector<256x128xf32>
    %80 = tpu.matmul %11, %79, %cst_67 {dimension_numbers = #tpu.dot_dimension_numbers<[1], [0], [0], [1], [0, 0, 1, 1], [], []>} : vector<256x4xbf16>, vector<4x128xbf16>, vector<256x128xf32> -> vector<256x128xf32>
    %81 = arith.addf %77, %80 : vector<256x128xf32>
    %c8 = arith.constant 8 : index
    %c0_68 = arith.constant 0 : index
    %c0_69 = arith.constant 0 : index
    %82 = vector.load %arg2[%c8, %c0_68, %c0_69] : memref<12x4x128xbf16, #tpu.memory_space<vmem>>, vector<1x4x128xbf16>
    %83 = vector.shape_cast %82 : vector<1x4x128xbf16> to vector<4x128xbf16>
    %cst_70 = arith.constant dense<0.000000e+00> : vector<256x128xf32>
    %84 = tpu.matmul %19, %83, %cst_70 {dimension_numbers = #tpu.dot_dimension_numbers<[1], [0], [0], [1], [0, 0, 1, 1], [], []>} : vector<256x4xbf16>, vector<4x128xbf16>, vector<256x128xf32> -> vector<256x128xf32>
    %85 = arith.addf %81, %84 : vector<256x128xf32>
    %c9 = arith.constant 9 : index
    %c0_71 = arith.constant 0 : index
    %c0_72 = arith.constant 0 : index
    %86 = vector.load %arg2[%c9, %c0_71, %c0_72] : memref<12x4x128xbf16, #tpu.memory_space<vmem>>, vector<1x4x128xbf16>
    %87 = vector.shape_cast %86 : vector<1x4x128xbf16> to vector<4x128xbf16>
    %cst_73 = arith.constant dense<0.000000e+00> : vector<256x128xf32>
    %88 = tpu.matmul %23, %87, %cst_73 {dimension_numbers = #tpu.dot_dimension_numbers<[1], [0], [0], [1], [0, 0, 1, 1], [], []>} : vector<256x4xbf16>, vector<4x128xbf16>, vector<256x128xf32> -> vector<256x128xf32>
    %89 = arith.addf %85, %88 : vector<256x128xf32>
    %c10 = arith.constant 10 : index
    %c0_74 = arith.constant 0 : index
    %c0_75 = arith.constant 0 : index
    %90 = vector.load %arg2[%c10, %c0_74, %c0_75] : memref<12x4x128xbf16, #tpu.memory_space<vmem>>, vector<1x4x128xbf16>
    %91 = vector.shape_cast %90 : vector<1x4x128xbf16> to vector<4x128xbf16>
    %cst_76 = arith.constant dense<0.000000e+00> : vector<256x128xf32>
    %92 = tpu.matmul %31, %91, %cst_76 {dimension_numbers = #tpu.dot_dimension_numbers<[1], [0], [0], [1], [0, 0, 1, 1], [], []>} : vector<256x4xbf16>, vector<4x128xbf16>, vector<256x128xf32> -> vector<256x128xf32>
    %93 = arith.addf %89, %92 : vector<256x128xf32>
    %c11 = arith.constant 11 : index
    %c0_77 = arith.constant 0 : index
    %c0_78 = arith.constant 0 : index
    %94 = vector.load %arg2[%c11, %c0_77, %c0_78] : memref<12x4x128xbf16, #tpu.memory_space<vmem>>, vector<1x4x128xbf16>
    %95 = vector.shape_cast %94 : vector<1x4x128xbf16> to vector<4x128xbf16>
    %cst_79 = arith.constant dense<0.000000e+00> : vector<256x128xf32>
    %96 = tpu.matmul %35, %95, %cst_79 {dimension_numbers = #tpu.dot_dimension_numbers<[1], [0], [0], [1], [0, 0, 1, 1], [], []>} : vector<256x4xbf16>, vector<4x128xbf16>, vector<256x128xf32> -> vector<256x128xf32>
    %97 = arith.addf %93, %96 : vector<256x128xf32>
    %c0_80 = arith.constant 0 : index
    %c0_81 = arith.constant 0 : index
    %c128 = arith.constant 128 : index
    %98 = vector.load %arg3[%c0_80, %c0_81, %c128] : memref<1x256x256xf32, #tpu.memory_space<vmem>>, vector<1x256x128xf32>
    %99 = vector.shape_cast %98 : vector<1x256x128xf32> to vector<256x128xf32>
    %100 = vector.shape_cast %97 : vector<256x128xf32> to vector<1x256x128xf32>
    tpu.vector_store %arg3[%c0_80, %c0_81, %c128], %100 {strides = array<i32>} : memref<1x256x256xf32, #tpu.memory_space<vmem>>, vector<1x256x128xf32>,
    %cst_82 = arith.constant dense<0.000000e+00> : vector<128xf32>
    %101 = vector.multi_reduction <add>, %97, %cst_82 [0] : vector<256x128xf32> to vector<128xf32>
    %102 = vector.shape_cast %101 : vector<128xf32> to vector<1x128xf32>
    %103 = arith.addf %68, %102 : vector<1x128xf32>
    %104 = arith.mulf %97, %97 : vector<256x128xf32>
    %cst_83 = arith.constant dense<0.000000e+00> : vector<128xf32>
    %105 = vector.multi_reduction <add>, %104, %cst_83 [0] : vector<256x128xf32> to vector<128xf32>
    %106 = vector.shape_cast %105 : vector<128xf32> to vector<1x128xf32>
    %107 = arith.addf %72, %106 : vector<1x128xf32>
    %c0_84 = arith.constant 0 : index
    %c0_85 = arith.constant 0 : index
    %c0_86 = arith.constant 0 : index
    %108 = vector.load %arg4[%c0_84, %c0_85, %c0_86] : memref<1x2x128xf32, #tpu.memory_space<vmem>>, vector<1x1x128xf32>
    %109 = vector.shape_cast %108 : vector<1x1x128xf32> to vector<1x128xf32>
    %110 = vector.shape_cast %103 : vector<1x128xf32> to vector<1x1x128xf32>
    tpu.vector_store %arg4[%c0_84, %c0_85, %c0_86], %110 {strides = array<i32>} : memref<1x2x128xf32, #tpu.memory_space<vmem>>, vector<1x1x128xf32>,
    %c0_87 = arith.constant 0 : index
    %c1_88 = arith.constant 1 : index
    %c0_89 = arith.constant 0 : index
    %111 = vector.load %arg4[%c0_87, %c1_88, %c0_89] : memref<1x2x128xf32, #tpu.memory_space<vmem>>, vector<1x1x128xf32>
    %112 = vector.shape_cast %111 : vector<1x1x128xf32> to vector<1x128xf32>
    %113 = vector.shape_cast %107 : vector<1x128xf32> to vector<1x1x128xf32>
    tpu.vector_store %arg4[%c0_87, %c1_88, %c0_89], %113 {strides = array<i32>} : memref<1x2x128xf32, #tpu.memory_space<vmem>>, vector<1x1x128xf32>,
    return
  }
  func.func @transform_0(%arg0: i32) -> (i32, i32, i32, i32) {
    %c0_i32 = arith.constant 0 : i32
    %c0_i32_0 = arith.constant 0 : i32
    %c0_i32_1 = arith.constant 0 : i32
    %c0_i32_2 = arith.constant 0 : i32
    return %arg0, %c0_i32, %c0_i32_0, %c0_i32_1 : i32, i32, i32, i32
  }
  func.func @transform_1(%arg0: i32) -> (i32, i32, i32) {
    %c0_i32 = arith.constant 0 : i32
    %c0_i32_0 = arith.constant 0 : i32
    %c0_i32_1 = arith.constant 0 : i32
    %c0_i32_2 = arith.constant 0 : i32
    return %c0_i32, %c0_i32_0, %c0_i32_1 : i32, i32, i32
  }
  func.func @transform_2(%arg0: i32) -> (i32, i32, i32) {
    %c0_i32 = arith.constant 0 : i32
    %c0_i32_0 = arith.constant 0 : i32
    %c0_i32_1 = arith.constant 0 : i32
    return %arg0, %c0_i32, %c0_i32_0 : i32, i32, i32
  }
  func.func @transform_3(%arg0: i32) -> (i32, i32, i32) {
    %c0_i32 = arith.constant 0 : i32
    %c0_i32_0 = arith.constant 0 : i32
    %c0_i32_1 = arith.constant 0 : i32
    return %arg0, %c0_i32, %c0_i32_0 : i32, i32, i32
  }
}

</mosaic_0001>

<bundles_post_ra>
// kernel: tpu_custom_call.1
= control target key start
LH: loop header
LB: loop body
LE: loop exit
PB: predicated region body
PF: predicated region fallthrough
CT: control target
= control target key end

     0   :  { %9 = vsyncpa [#allocation3], 0  ;;  %s6334_s0 = inlined_call_operand.vmem [shape: f32[2,18,18,4], index: 0, kind: input, shape index: {}]   ;;  %s6335_s1 = inlined_call_operand.vmem [shape: bf16[12,4,128], index: 1, kind: input, shape index: {}]   ;;  %s6336_s2 = inlined_call_operand.hbm [shape: f32[2,256,256], index: 2, kind: output, shape index: {0}]   ;;  %s6337_s3 = inlined_call_operand.hbm [shape: f32[2,2,128], index: 3, kind: output, shape index: {1}]  }
   0x1   :  { %11 = vsyncpa [#allocation3 + $0x1], 0 }
   0x2   :  { %12 = vsyncpa [#allocation5], 0 }
   0x3   :  { %14 = vsyncpa [#allocation5 + $0x1], 0  ;;  %s4901_s12 = smov 0   ;;  %s4903_s13 = smov 0  }
   0x4   :  { %s4905_s14 = smov 0   ;;  %s4907_s15 = smov 0  }
   0x5 LB: > { %s4922_s16 = sadd.s32 4294967295, %s4875_s15   ;;  %s3704_s17 = sadd.s32 4294967294, %s4875_s15   ;;  %s4875_s15 = sphi %s4907_s15, %s6580_s15   ;;  %s4871_s14 = sphi %s4905_s14, %s6579_s14   ;;  %s4867_s13 = sphi %s4903_s13, %s6578_s13   ;;  %s4863_s12 = sphi %s4901_s12, %s6577_s12  }
   0x6   : > { %s4926_s18 = sadd.s32 1, %s4875_s15   ;;  %s74_s19 = sadd.s32 1, %s4871_s14 }
   0x7   : > { %s71_s20 = ssub.s32 %s4875_s15, %s4926_s18  ;;  %p84_p0 = scmp.ne.s32.totalorder %s4871_s14, %s4867_s13 }
   0x8   : > { %p72_p1 = scmp.eq.s32.totalorder %s71_s20, 0  ;;  %p85_p2 = scmp.eq.s32.totalorder %s4922_s16, 1 }
   0x9   : > { %p90_p3 = scmp.ne.s32.totalorder %s4867_s13, %s4863_s12  ;;  %p91_p4 = scmp.eq.s32.totalorder %s3704_s17, 1 }
   0xa   : > { %s4937_s21 = scalar_select %p72_p1, %s4871_s14, %s74_s19  }
   0xb   : > { %p4939_p5 = por %p85_p2, %p84_p0  ;;  %p4943_p6 = por %p91_p4, %p90_p3 }
   0xc   : > { %p3707_p7 = scmp.ge.s32.totalorder %s4875_s15, 1  ;;  %p146_p8 = scmp.lt.s32.totalorder %s4875_s15, 3 }
   0xe   : > { %p147_p9 = pnand %p3707_p7, %p146_p8 }
  0x10   : > { %150 = sbr.rel (%p147_p9) target bundleno = 658 (0x292), region = 28 }
  0x15   : > { %v3903_v0 = vld [vmem:[%s6335_s1 + $0x2] sm:$0x3]  ;;  %vm667_vm0 = vcmask 1041408   ;;  %v615_v1 = vld [vmem:[%s6335_s1] sm:$0x3]  ;;  %p175_p10 = scmp.lt.s32.totalorder %s4922_s16, 1 }
  0x16   : > { %4726 = vmatprep.subr.msk.bf16.mxu0 %vm667_vm0, %v3903_v0  ;;  %v669_v2 = vsel %vm667_vm0, %v3903_v0, 0  ;;  %4727 = vmatprep.subr.msk.bf16.mxu1 %vm667_vm0, %v615_v1  ;;  %v881_v3 = vsel %vm667_vm0, %v615_v1, 0  ;;  %v3936_v4 = vld [vmem:[%s6335_s1 + $0x4] sm:$0x3]  ;;  %v3953_v5 = vld [vmem:[%s6335_s1 + $0x6] sm:$0x3] }
  0x17   : > { %4319 = vmatpush3.bf16.msra.mxu0 %v669_v2  ;;  %4353 = vmatpush3.bf16.msra.mxu1 %v881_v3  ;;  %s176_s30 = scalar_select %p175_p10, %s4922_s16, 1  ;;  %vm618_vm1 = vcmask 31744   ;;  %v1095_v17 = vsel %vm667_vm0, %v3936_v4, 0  ;;  %v1341_v20 = vsel %vm667_vm0, %v3953_v5, 0  ;;  %v5006_v26 = vld [vmem:[%s6335_s1 + $0x8] sm:$0x3] }
  0x18   : > { %4728 = vmatprep.subr.msk.bf16.mxu0 %vm667_vm0, %v3936_v4  ;;  %4729 = vmatprep.subr.msk.bf16.mxu1 %vm667_vm0, %v3953_v5  ;;  %v5011_v27 = vld [vmem:[%s6335_s1 + $0xa] sm:$0x3]  ;;  %s5744_s8 = sand.u32 1, %s4867_s13   ;;  %s4877_s27 = smov [#allocation2]  }
  0x19   : > { %s4738_s6 = smul.u32 432, %s176_s30  ;;  %s3708_s10 = sshll.u32 %s5744_s8, 9 }
  0x1a   : > { %s5775_s11 = scalar_lea.vmem [#allocation2], %s3708_s10  ;;  %s3579_s25 = scalar_lea.sflag [#allocation3], %s5744_s8 }
  0x1b   : > { %s4972_s9 = scalar_lea.vmem %s6334_s0, %s4738_s6  ;;  %s3597_s17 = sshll.u32 %s5775_s11, 4  ;;  %s6266_s17 = int_to_ptr.vmem [resolvable:$true] %s3597_s17 }
  0x1c   : > { %v229_v6 = vld [vmem:[%s4972_s9 + $0x1] sm:$0xff]  ;;  %v230_v7 = vld [vmem:[%s4972_s9 + $0x9] sm:$0xff]  ;;  %v231_v11 = vld [vmem:[%s4972_s9 + $0x19] sm:$0xff]  ;;  %s4785_s26 = scalar_lea.vmem %s6266_s17, 8192  ;;  %s4789_s28 = sshll.u32 %s4877_s27, 4  ;;  %s4790_s28 = int_to_ptr.vmem [resolvable:$false] %s4789_s28 }
  0x1d   : > { %v181_v8 = vld [vmem:[%s4972_s9] sm:$0xff]  ;;  %v4977_v9 = vpack.c.bf16 %v230_v7, %v229_v6  ;;  %v182_v10 = vld [vmem:[%s4972_s9 + $0x8] sm:$0xff]  ;;  %v183_v15 = vld [vmem:[%s4972_s9 + $0x18] sm:$0xff]  ;;  %p4786_p11 = scmp.ne.s32.totalorder %s6266_s17, %s4785_s26  ;;  %s4791_s29 = scalar_lea.vmem %s4790_s28, 16384 }
  0x1e   : > { %v232_v12 = vld [vmem:[%s4972_s9 + $0x21] sm:$0xff]  ;;  %v213_v13 = vpack.c.bf16 %v182_v10, %v181_v8  ;;  %v233_v18 = vld [vmem:[%s4972_s9 + $0x31] sm:$0xff]  ;;  %v234_v21 = vld [vmem:[%s4972_s9 + $0x39] sm:$0xff]  ;;  %p4792_p0 = scmp.lt.s32.totalorder %s6266_s17, %s4790_s28  ;;  %p4793_p1 = scmp.lt.s32.totalorder %s4791_s29, %s4785_s26 }
  0x1f   : > { %v4982_v14 = vpack.c.bf16 %v232_v12, %v231_v11  ;;  %v184_v16 = vld [vmem:[%s4972_s9 + $0x20] sm:$0xff]  ;;  %4320 = vmatprep.mubr.msk.bf16.mxu0 %vm618_vm1, %v4977_v9  ;;  %v185_v22 = vld [vmem:[%s4972_s9 + $0x30] sm:$0xff]  ;;  %v186_v23 = vld [vmem:[%s4972_s9 + $0x38] sm:$0xff]  ;;  %v4999_v24 = vpack.c.bf16 %v234_v21, %v233_v18  ;;  %p4787_p12 = pnand %p4786_p11, %p4939_p5 }
  0x20   : > { %v4990_v19 = vpack.c.bf16 %v184_v16, %v183_v15  ;;  %4354 = vmatprep.mubr.msk.bf16.mxu1 %vm618_vm1, %v213_v13  ;;  %v5001_v25 = vpack.c.bf16 %v186_v23, %v185_v22  ;;  %v235_v28 = vld [vmem:[%s4972_s9 + $0x49] sm:$0xff]  ;;  %v236_v29 = vld [vmem:[%s4972_s9 + $0x51] sm:$0xff]  ;;  %v237_v32 = vld [vmem:[%s4972_s9 + $0x61] sm:$0xff]  ;;  %p4794_p2 = por %p4793_p1, %p4792_p0 }
  0x21   : > { %4321 = vmatmul.mubr.msk.bf16.vlgmr.msra.gmra.mxu0 %vm618_vm1, %v4982_v14  ;;  %v187_v30 = vld [vmem:[%s4972_s9 + $0x48] sm:$0xff]  ;;  %v188_v31 = vld [vmem:[%s4972_s9 + $0x50] sm:$0xff]  ;;  %v189_v34 = vld [vmem:[%s4972_s9 + $0x60] sm:$0xff]  ;;  %v5029_v36 = vpack.c.bf16 %v236_v29, %v235_v28  ;;  %p4788_p13 = pneg %p4787_p12 }
  0x22   : > { %4355 = vmatmul.mubr.msk.bf16.vlgmr.msra.gmra.mxu1 %vm618_vm1, %v4990_v19  ;;  %4387 = vmatpush3.bf16.msra.mxu0 %v1095_v17  ;;  %v238_v33 = vld [vmem:[%s4972_s9 + $0x69] sm:$0xff]  ;;  %v5033_v37 = vpack.c.bf16 %v188_v31, %v187_v30  ;;  %v239_v40 = vld [vmem:[%s4972_s9 + $0x79] sm:$0xff]  ;;  %v240_v41 = vld [vmem:[%s4972_s9 + $0x81] sm:$0xff] }
  0x23   : > { %4421 = vmatpush3.bf16.msra.mxu1 %v1341_v20  ;;  %4324 = vmatprep.mubr.msk.bf16.mxu0 %vm618_vm1, %v4999_v24  ;;  %v190_v35 = vld [vmem:[%s4972_s9 + $0x68] sm:$0xff]  ;;  %v5035_v38 = vpack.c.bf16 %v238_v33, %v237_v32  ;;  %v191_v42 = vld [vmem:[%s4972_s9 + $0x78] sm:$0xff]  ;;  %v192_v43 = vld [vmem:[%s4972_s9 + $0x80] sm:$0xff]  ;;  %v5055_v48 = vpack.c.bf16 %v240_v41, %v239_v40  ;;  %p4795_p3 = pnand %p4794_p2, %p4788_p13 }
  0x24   : > { %4358 = vmatprep.mubr.msk.bf16.mxu1 %vm618_vm1, %v5001_v25  ;;  %4730 = vmatprep.subr.msk.bf16.mxu0 %vm667_vm0, %v5006_v26  ;;  %v5037_v39 = vpack.c.bf16 %v190_v35, %v189_v34  ;;  %v241_v44 = vld [vmem:[%s4972_s9 + $0x91] sm:$0xff]  ;;  %v242_v45 = vld [vmem:[%s4972_s9 + $0x99] sm:$0xff]  ;;  %v5057_v49 = vpack.c.bf16 %v192_v43, %v191_v42  ;;  %v243_v52 = vld [vmem:[%s4972_s9 + $0xa9] sm:$0xff] }
  0x25   : > { %4731 = vmatprep.subr.msk.bf16.mxu1 %vm667_vm0, %v5011_v27  ;;  %v193_v46 = vld [vmem:[%s4972_s9 + $0x90] sm:$0xff]  ;;  %v194_v47 = vld [vmem:[%s4972_s9 + $0x98] sm:$0xff]  ;;  %v5059_v50 = vpack.c.bf16 %v242_v45, %v241_v44  ;;  %v195_v54 = vld [vmem:[%s4972_s9 + $0xa8] sm:$0xff] }
  0x26   : > { %v5061_v51 = vpack.c.bf16 %v194_v47, %v193_v46  ;;  %v244_v53 = vld [vmem:[%s4972_s9 + $0xb1] sm:$0xff]  ;;  %v245_v56 = vld [vmem:[%s4972_s9 + $0xc1] sm:$0xff]  ;;  %v246_v57 = vld [vmem:[%s4972_s9 + $0xc9] sm:$0xff] }
  0x27   : > { %v196_v55 = vld [vmem:[%s4972_s9 + $0xb0] sm:$0xff]  ;;  %v197_v58 = vld [vmem:[%s4972_s9 + $0xc0] sm:$0xff]  ;;  %v198_v59 = vld [vmem:[%s4972_s9 + $0xc8] sm:$0xff]  ;;  %v5079_v60 = vpack.c.bf16 %v244_v53, %v243_v52  ;;  %v5083_v62 = vpack.c.bf16 %v246_v57, %v245_v56  ;;  %v1587_v57 = vsel %vm667_vm0, %v5006_v26, 0 }
  0x28   : > { %v5081_v61 = vpack.c.bf16 %v196_v55, %v195_v54  ;;  %v5085_v63 = vpack.c.bf16 %v198_v59, %v197_v58  ;;  %v247_v0 = vld [vmem:[%s4972_s9 + $0xd9] sm:$0xff]  ;;  %v248_v1 = vld [vmem:[%s4972_s9 + $0xe1] sm:$0xff]  ;;  %v249_v4 = vld [vmem:[%s4972_s9 + $0xf1] sm:$0xff]  ;;  %v1833_v58 = vsel %vm667_vm0, %v5011_v27, 0 }
  0x29   : > { %4325 = vmatmul.mubr.msk.bf16.gmra.mxu0 %vm618_vm1, %v5029_v36  ;;  %6359 = vst [vmem:[#allocation8_spill] sm:$0xff] %v5079_v60  ;;  %6360 = vst [vmem:[#allocation9_spill] sm:$0xff] %v5083_v62  ;;  %v199_v2 = vld [vmem:[%s4972_s9 + $0xd8] sm:$0xff]  ;;  %v200_v3 = vld [vmem:[%s4972_s9 + $0xe0] sm:$0xff]  ;;  %v5103_v8 = vpack.c.bf16 %v248_v1, %v247_v0 }
  0x2a   : > { %4359 = vmatmul.mubr.msk.bf16.gmra.mxu1 %vm618_vm1, %v5033_v37  ;;  %4328 = vmatprep.mubr.msk.bf16.mxu0 %vm618_vm1, %v5035_v38  ;;  %v250_v5 = vld [vmem:[%s4972_s9 + $0xf9] sm:$0xff]  ;;  %v201_v6 = vld [vmem:[%s4972_s9 + $0xf0] sm:$0xff]  ;;  %v5105_v10 = vpack.c.bf16 %v200_v3, %v199_v2  ;;  %v203_v16 = vld [vmem:[%s4972_s9 + $0x108] sm:$0xff] }
  0x2b   : > { %4362 = vmatprep.mubr.msk.bf16.mxu1 %vm618_vm1, %v5037_v39  ;;  %v202_v7 = vld [vmem:[%s4972_s9 + $0xf8] sm:$0xff]  ;;  %6361 = vst [vmem:[#allocation10_spill] sm:$0xff] %v5103_v8  ;;  %v5107_v11 = vpack.c.bf16 %v250_v5, %v249_v4  ;;  %v251_v13 = vld [vmem:[%s4972_s9 + $0x109] sm:$0xff]  ;;  %v253_v18 = vld [vmem:[%s4972_s9 + $0x121] sm:$0xff] }
  0x2c   : > { %v5109_v12 = vpack.c.bf16 %v202_v7, %v201_v6  ;;  %v252_v15 = vld [vmem:[%s4972_s9 + $0x111] sm:$0xff]  ;;  %v254_v20 = vld [vmem:[%s4972_s9 + $0x129] sm:$0xff]  ;;  %v205_v21 = vld [vmem:[%s4972_s9 + $0x120] sm:$0xff] }
  0x2d   : > { %6362 = vst [vmem:[#allocation11_spill] sm:$0xff] %v5107_v11  ;;  %v204_v17 = vld [vmem:[%s4972_s9 + $0x110] sm:$0xff]  ;;  %v206_v22 = vld [vmem:[%s4972_s9 + $0x128] sm:$0xff]  ;;  %v5127_v23 = vpack.c.bf16 %v252_v15, %v251_v13  ;;  %v5131_v29 = vpack.c.bf16 %v254_v20, %v253_v18  ;;  %v255_v31 = vld [vmem:[%s4972_s9 + $0x139] sm:$0xff] }
  0x2e   : > { %v5129_v28 = vpack.c.bf16 %v204_v17, %v203_v16  ;;  %v5133_v30 = vpack.c.bf16 %v206_v22, %v205_v21  ;;  %v256_v32 = vld [vmem:[%s4972_s9 + $0x141] sm:$0xff]  ;;  %v207_v33 = vld [vmem:[%s4972_s9 + $0x138] sm:$0xff]  ;;  %v209_v41 = vld [vmem:[%s4972_s9 + $0x150] sm:$0xff] }
  0x2f   : > { %6363 = vst [vmem:[#allocation12_spill] sm:$0xff] %v5127_v23  ;;  %6364 = vst [vmem:[#allocation13_spill] sm:$0xff] %v5131_v29  ;;  %v208_v34 = vld [vmem:[%s4972_s9 + $0x140] sm:$0xff]  ;;  %v257_v35 = vld [vmem:[%s4972_s9 + $0x151] sm:$0xff]  ;;  %v5151_v43 = vpack.c.bf16 %v256_v32, %v255_v31 }
  0x30   : > { %v258_v40 = vld [vmem:[%s4972_s9 + $0x159] sm:$0xff]  ;;  %v5153_v44 = vpack.c.bf16 %v208_v34, %v207_v33  ;;  %v259_v47 = vld [vmem:[%s4972_s9 + $0x169] sm:$0xff]  ;;  %v260_v52 = vld [vmem:[%s4972_s9 + $0x171] sm:$0xff] }
  0x31   : > { %4329 = vmatmul.mubr.msk.bf16.gmra.mxu0 %vm618_vm1, %v5055_v48  ;;  %v210_v42 = vld [vmem:[%s4972_s9 + $0x158] sm:$0xff]  ;;  %6365 = vst [vmem:[#allocation14_spill] sm:$0xff] %v5151_v43  ;;  %v5155_v45 = vpack.c.bf16 %v258_v40, %v257_v35  ;;  %v211_v53 = vld [vmem:[%s4972_s9 + $0x168] sm:$0xff]  ;;  %v212_v54 = vld [vmem:[%s4972_s9 + $0x170] sm:$0xff]  ;;  %v5171_v55 = vpack.c.bf16 %v260_v52, %v259_v47 }
  0x32   : > { %4363 = vmatmul.mubr.msk.bf16.gmra.mxu1 %vm618_vm1, %v5057_v49  ;;  %4332 = vmatprep.mubr.msk.bf16.mxu0 %vm618_vm1, %v5059_v50  ;;  %v5157_v46 = vpack.c.bf16 %v210_v42, %v209_v41  ;;  %v5173_v56 = vpack.c.bf16 %v212_v54, %v211_v53  ;;  %v4005_v59 = vld [vmem:[%s6335_s1 + $0xe] sm:$0x3]  ;;  %v3741_v26 = vld [vmem:[%s4972_s9 + $0x180] sm:$0xff]  ;;  %v4038_v6 = vld [vmem:[%s6335_s1 + $0x10] sm:$0x3] }
  0x33   : > { %4366 = vmatprep.mubr.msk.bf16.mxu1 %vm618_vm1, %v5061_v51  ;;  %6366 = vst [vmem:[#allocation15_spill] sm:$0xff] %v5155_v45  ;;  %6367 = vst [vmem:[#allocation16_spill] sm:$0xff] %v5171_v55  ;;  %v3742_v27 = vld [vmem:[%s4972_s9 + $0x188] sm:$0xff]  ;;  %v2221_v4 = vsel %vm667_vm0, %v4005_v59, 0  ;;  %v279_v13 = vld [vmem:[%s4972_s9 + $0x1a] sm:$0xff]  ;;  %v2551_v20 = vsel %vm667_vm0, %v4038_v6, 0 }
  0x34   : > { %v3773_v0 = vld [vmem:[%s4972_s9 + $0x181] sm:$0xff]  ;;  %v3774_v1 = vld [vmem:[%s4972_s9 + $0x189] sm:$0xff]  ;;  %v373_v2 = vpack.c.bf16 %v3742_v27, %v3741_v26  ;;  %v281_v16 = vld [vmem:[%s4972_s9 + $0x32] sm:$0xff] }
  0x35   : > { %v5255_v3 = vpack.c.bf16 %v3774_v1, %v3773_v0  ;;  %v280_v15 = vld [vmem:[%s4972_s9 + $0x22] sm:$0xff]  ;;  %v282_v17 = vld [vmem:[%s4972_s9 + $0x3a] sm:$0xff]  ;;  %v283_v31 = vld [vmem:[%s4972_s9 + $0x4a] sm:$0xff] }
  0x36   : > { %v5347_v18 = vpack.c.bf16 %v280_v15, %v279_v13  ;;  %v5350_v21 = vpack.c.bf16 %v282_v17, %v281_v16  ;;  %v284_v32 = vld [vmem:[%s4972_s9 + $0x52] sm:$0xff]  ;;  %v285_v40 = vld [vmem:[%s4972_s9 + $0x62] sm:$0xff]  ;;  %v286_v41 = vld [vmem:[%s4972_s9 + $0x6a] sm:$0xff] }
  0x37   : > { %v5367_v33 = vld [vmem:[%s6335_s1 + $0x16] sm:$0x3]  ;;  %v5381_v47 = vpack.c.bf16 %v284_v32, %v283_v31  ;;  %v5385_v53 = vpack.c.bf16 %v286_v41, %v285_v40  ;;  %v287_v26 = vld [vmem:[%s4972_s9 + $0x7a] sm:$0xff]  ;;  %v288_v27 = vld [vmem:[%s4972_s9 + $0x82] sm:$0xff] }
  0x38   : > { %v291_v15 = vld [vmem:[%s4972_s9 + $0xaa] sm:$0xff]  ;;  %v292_v16 = vld [vmem:[%s4972_s9 + $0xb2] sm:$0xff] }
  0x39   : > { %4333 = vmatmul.mubr.msk.bf16.gmra.mxu0 %vm618_vm1, %v5079_v60 }
  0x3a   : > { %4367 = vmatmul.mubr.msk.bf16.gmra.mxu1 %vm618_vm1, %v5081_v61  ;;  %4336 = vmatprep.mubr.msk.bf16.mxu0 %vm618_vm1, %v5083_v62 }
  0x3b   : > { %4370 = vmatprep.mubr.msk.bf16.mxu1 %vm618_vm1, %v5085_v63 }
  0x41   : > { %4337 = vmatmul.mubr.msk.bf16.gmra.mxu0 %vm618_vm1, %v5103_v8 }
  0x42   : > { %4371 = vmatmul.mubr.msk.bf16.gmra.mxu1 %vm618_vm1, %v5105_v10  ;;  %4340 = vmatprep.mubr.msk.bf16.mxu0 %vm618_vm1, %v5107_v11 }
  0x43   : > { %4374 = vmatprep.mubr.msk.bf16.mxu1 %vm618_vm1, %v5109_v12 }
  0x49   : > { %4341 = vmatmul.mubr.msk.bf16.gmra.mxu0 %vm618_vm1, %v5127_v23 }
  0x4a   : > { %4375 = vmatmul.mubr.msk.bf16.gmra.mxu1 %vm618_vm1, %v5129_v28  ;;  %4344 = vmatprep.mubr.msk.bf16.mxu0 %vm618_vm1, %v5131_v29 }
  0x4b   : > { %4378 = vmatprep.mubr.msk.bf16.mxu1 %vm618_vm1, %v5133_v30 }
  0x51   : > { %4345 = vmatmul.mubr.msk.bf16.gmra.mxu0 %vm618_vm1, %v5151_v43 }
  0x52   : > { %4379 = vmatmul.mubr.msk.bf16.gmra.mxu1 %vm618_vm1, %v5153_v44  ;;  %4348 = vmatprep.mubr.msk.bf16.mxu0 %vm618_vm1, %v5155_v45 }
  0x53   : > { %4382 = vmatprep.mubr.msk.bf16.mxu1 %vm618_vm1, %v5157_v46 }
  0x59   : > { %4349 = vmatmul.mubr.msk.bf16.gmra.mxu0 %vm618_vm1, %v5171_v55 }
  0x5a   : > { %4383 = vmatmul.mubr.msk.bf16.gmra.mxu1 %vm618_vm1, %v5173_v56  ;;  %4388 = vmatprep.mubr.msk.bf16.mxu0 %vm618_vm1, %v4990_v19  ;;  %v4004_v19 = vld [vmem:[%s6335_s1 + $0xc] sm:$0x3] }
  0x5b   : > { %4422 = vmatprep.mubr.msk.bf16.mxu1 %vm618_vm1, %v4982_v14  ;;  %v2385_v5 = vsel %vm667_vm0, %v4004_v19, 0 }
  0x61   : > { %4389 = vmatmul.mubr.msk.bf16.vlgmr.msra.gmra.mxu0 %vm618_vm1, %v5001_v25 }
  0x62   : > { %4423 = vmatmul.mubr.msk.bf16.vlgmr.msra.gmra.mxu1 %vm618_vm1, %v4999_v24  ;;  %4455 = vmatpush3.bf16.msra.mxu0 %v1587_v57 }
  0x63   : > { %4489 = vmatpush3.bf16.msra.mxu1 %v1833_v58  ;;  %4392 = vmatprep.mubr.msk.bf16.mxu0 %vm618_vm1, %v5033_v37 }
  0x64   : > { %4426 = vmatprep.mubr.msk.bf16.mxu1 %vm618_vm1, %v5029_v36  ;;  %4732 = vmatprep.subr.msk.bf16.mxu0 %vm667_vm0, %v4005_v59 }
  0x65   : > { %4733 = vmatprep.subr.msk.bf16.mxu1 %vm667_vm0, %v4004_v19 }
  0x69   : > { %4393 = vmatmul.mubr.msk.bf16.gmra.mxu0 %vm618_vm1, %v5037_v39 }
  0x6a   : > { %4427 = vmatmul.mubr.msk.bf16.gmra.mxu1 %vm618_vm1, %v5035_v38  ;;  %4396 = vmatprep.mubr.msk.bf16.mxu0 %vm618_vm1, %v5057_v49 }
  0x6b   : > { %4430 = vmatprep.mubr.msk.bf16.mxu1 %vm618_vm1, %v5055_v48 }
  0x71   : > { %4397 = vmatmul.mubr.msk.bf16.gmra.mxu0 %vm618_vm1, %v5061_v51 }
  0x72   : > { %4431 = vmatmul.mubr.msk.bf16.gmra.mxu1 %vm618_vm1, %v5059_v50  ;;  %4400 = vmatprep.mubr.msk.bf16.mxu0 %vm618_vm1, %v5081_v61 }
  0x73   : > { %4434 = vmatprep.mubr.msk.bf16.mxu1 %vm618_vm1, %v5079_v60 }
  0x79   : > { %4401 = vmatmul.mubr.msk.bf16.gmra.mxu0 %vm618_vm1, %v5085_v63 }
  0x7a   : > { %4435 = vmatmul.mubr.msk.bf16.gmra.mxu1 %vm618_vm1, %v5083_v62  ;;  %4404 = vmatprep.mubr.msk.bf16.mxu0 %vm618_vm1, %v5105_v10 }
  0x7b   : > { %4438 = vmatprep.mubr.msk.bf16.mxu1 %vm618_vm1, %v5103_v8 }
  0x81   : > { %4405 = vmatmul.mubr.msk.bf16.gmra.mxu0 %vm618_vm1, %v5109_v12 }
  0x82   : > { %4439 = vmatmul.mubr.msk.bf16.gmra.mxu1 %vm618_vm1, %v5107_v11  ;;  %4408 = vmatprep.mubr.msk.bf16.mxu0 %vm618_vm1, %v5129_v28 }
  0x83   : > { %4442 = vmatprep.mubr.msk.bf16.mxu1 %vm618_vm1, %v5127_v23 }
  0x89   : > { %4409 = vmatmul.mubr.msk.bf16.gmra.mxu0 %vm618_vm1, %v5133_v30 }
  0x8a   : > { %4443 = vmatmul.mubr.msk.bf16.gmra.mxu1 %vm618_vm1, %v5131_v29  ;;  %4412 = vmatprep.mubr.msk.bf16.mxu0 %vm618_vm1, %v5153_v44 }
  0x8b   : > { %4446 = vmatprep.mubr.msk.bf16.mxu1 %vm618_vm1, %v5151_v43 }
  0x91   : > { %4413 = vmatmul.mubr.msk.bf16.gmra.mxu0 %vm618_vm1, %v5157_v46 }
  0x92   : > { %4447 = vmatmul.mubr.msk.bf16.gmra.mxu1 %vm618_vm1, %v5155_v45  ;;  %4416 = vmatprep.mubr.msk.bf16.mxu0 %vm618_vm1, %v5173_v56 }
  0x93   : > { %4450 = vmatprep.mubr.msk.bf16.mxu1 %vm618_vm1, %v5171_v55 }
  0x99   : > { %4417 = vmatmul.mubr.msk.bf16.gmra.mxu0 %vm618_vm1, %v373_v2 }
  0x9a   : > { %4451 = vmatmul.mubr.msk.bf16.gmra.mxu1 %vm618_vm1, %v5255_v3  ;;  %4456 = vmatprep.mubr.msk.bf16.mxu0 %vm618_vm1, %v5001_v25  ;;  %v4055_v25 = vld [vmem:[%s6335_s1 + $0x12] sm:$0x3] }
  0x9b   : > { %4490 = vmatprep.mubr.msk.bf16.mxu1 %vm618_vm1, %v4999_v24  ;;  %v2797_v22 = vsel %vm667_vm0, %v4055_v25, 0 }
  0xa1   : > { %4457 = vmatmul.mubr.msk.bf16.vlgmr.msra.gmra.mxu0 %vm618_vm1, %v5033_v37  ;;  %v3837_v37 = vld [vmem:[%s4972_s9 + $0x198] sm:$0xff] }
  0xa2   : > { %4491 = vmatmul.mubr.msk.bf16.vlgmr.msra.gmra.mxu1 %vm618_vm1, %v5029_v36  ;;  %4523 = vmatpush3.bf16.msra.mxu0 %v2221_v4  ;;  %v290_v4 = vld [vmem:[%s4972_s9 + $0x9a] sm:$0xff] }
  0xa3   : > { %4557 = vmatpush3.bf16.msra.mxu1 %v2385_v5  ;;  %4460 = vmatprep.mubr.msk.bf16.mxu0 %vm618_vm1, %v5037_v39  ;;  %v3838_v39 = vld [vmem:[%s4972_s9 + $0x1a0] sm:$0xff] }
  0xa4   : > { %4494 = vmatprep.mubr.msk.bf16.mxu1 %vm618_vm1, %v5035_v38  ;;  %4734 = vmatprep.subr.msk.bf16.mxu0 %vm667_vm0, %v4038_v6  ;;  %v518_v7 = vpack.c.bf16 %v3838_v39, %v3837_v37  ;;  %v5407_v37 = vpack.c.bf16 %v288_v27, %v287_v26  ;;  %v296_v26 = vld [vmem:[%s4972_s9 + $0xe2] sm:$0xff] }
  0xa5   : > { %4735 = vmatprep.subr.msk.bf16.mxu1 %vm667_vm0, %v4055_v25 }
  0xa9   : > { %4461 = vmatmul.mubr.msk.bf16.gmra.mxu0 %vm618_vm1, %v5057_v49  ;;  %v3869_v49 = vld [vmem:[%s4972_s9 + $0x199] sm:$0xff] }
  0xaa   : > { %4495 = vmatmul.mubr.msk.bf16.gmra.mxu1 %vm618_vm1, %v5055_v48  ;;  %4464 = vmatprep.mubr.msk.bf16.mxu0 %vm618_vm1, %v5061_v51  ;;  %v3870_v51 = vld [vmem:[%s4972_s9 + $0x1a1] sm:$0xff] }
  0xab   : > { %4498 = vmatprep.mubr.msk.bf16.mxu1 %vm618_vm1, %v5059_v50 }
  0xb1   : > { %4465 = vmatmul.mubr.msk.bf16.gmra.mxu0 %vm618_vm1, %v5081_v61  ;;  %v277_v61 = vld [vmem:[%s4972_s9 + $0x2] sm:$0xff] }
  0xb2   : > { %4499 = vmatmul.mubr.msk.bf16.gmra.mxu1 %vm618_vm1, %v5079_v60  ;;  %4468 = vmatprep.mubr.msk.bf16.mxu0 %vm618_vm1, %v5085_v63  ;;  %v278_v63 = vld [vmem:[%s4972_s9 + $0xa] sm:$0xff] }
  0xb3   : > { %4502 = vmatprep.mubr.msk.bf16.mxu1 %vm618_vm1, %v5083_v62 }
  0xb9   : > { %4469 = vmatmul.mubr.msk.bf16.gmra.mxu0 %vm618_vm1, %v5105_v10  ;;  %v5335_v10 = vpack.c.bf16 %v3870_v51, %v3869_v49 }
  0xba   : > { %4503 = vmatmul.mubr.msk.bf16.gmra.mxu1 %vm618_vm1, %v5103_v8  ;;  %4472 = vmatprep.mubr.msk.bf16.mxu0 %vm618_vm1, %v5109_v12  ;;  %v309_v12 = vpack.c.bf16 %v278_v63, %v277_v61 }
  0xbb   : > { %4506 = vmatprep.mubr.msk.bf16.mxu1 %vm618_vm1, %v5107_v11  ;;  %6368 = vst [vmem:[#allocation17_spill] sm:$0xff] %v5335_v10 }
  0xc1   : > { %4473 = vmatmul.mubr.msk.bf16.gmra.mxu0 %vm618_vm1, %v5129_v28 }
  0xc2   : > { %4507 = vmatmul.mubr.msk.bf16.gmra.mxu1 %vm618_vm1, %v5127_v23  ;;  %4476 = vmatprep.mubr.msk.bf16.mxu0 %vm618_vm1, %v5133_v30 }
  0xc3   : > { %4510 = vmatprep.mubr.msk.bf16.mxu1 %vm618_vm1, %v5131_v29 }
  0xc9   : > { %4477 = vmatmul.mubr.msk.bf16.gmra.mxu0 %vm618_vm1, %v5153_v44 }
  0xca   : > { %4511 = vmatmul.mubr.msk.bf16.gmra.mxu1 %vm618_vm1, %v5151_v43  ;;  %4480 = vmatprep.mubr.msk.bf16.mxu0 %vm618_vm1, %v5157_v46 }
  0xcb   : > { %4514 = vmatprep.mubr.msk.bf16.mxu1 %vm618_vm1, %v5155_v45 }
  0xd1   : > { %4481 = vmatmul.mubr.msk.bf16.gmra.mxu0 %vm618_vm1, %v5173_v56 }
  0xd2   : > { %4515 = vmatmul.mubr.msk.bf16.gmra.mxu1 %vm618_vm1, %v5171_v55  ;;  %4484 = vmatprep.mubr.msk.bf16.mxu0 %vm618_vm1, %v373_v2  ;;  %v289_v2 = vld [vmem:[%s4972_s9 + $0x92] sm:$0xff] }
  0xd3   : > { %4518 = vmatprep.mubr.msk.bf16.mxu1 %vm618_vm1, %v5255_v3  ;;  %v5409_v49 = vpack.c.bf16 %v290_v4, %v289_v2  ;;  %v297_v2 = vld [vmem:[%s4972_s9 + $0xf2] sm:$0xff]  ;;  %v298_v4 = vld [vmem:[%s4972_s9 + $0xfa] sm:$0xff] }
  0xd9   : > { %4485 = vmatmul.mubr.msk.bf16.gmra.mxu0 %vm618_vm1, %v518_v7 }
  0xda   : > { %4519 = vmatmul.mubr.msk.bf16.gmra.mxu1 %vm618_vm1, %v5335_v10  ;;  %4524 = vmatprep.mubr.msk.bf16.mxu0 %vm618_vm1, %v309_v12 }
  0xdb   : > { %4558 = vmatprep.mubr.msk.bf16.mxu1 %vm618_vm1, %v4977_v9  ;;  %v5358_v9 = vld [vmem:[%s6335_s1 + $0x14] sm:$0x3] }
  0xe1   : > { %v4322_v28 = vpop.f32.mrf.mxu0  ;;  %4525 = vmatmul.mubr.msk.bf16.vlgmr.msra.gmra.mxu0 %vm618_vm1, %v5347_v18 }
  0xe2   : > { %v4356_v30 = vpop.f32.mrf.mxu1  ;;  %4559 = vmatmul.mubr.msk.bf16.vlgmr.msra.gmra.mxu1 %vm618_vm1, %v4982_v14  ;;  %4591 = vmatpush3.bf16.msra.mxu0 %v2551_v20 }
  0xe3   : > { %v5369_v34 = vadd.f32 %v4356_v30, %v4322_v28  ;;  %v705_v35 = vpop.f32.mrf.mxu0  ;;  %4625 = vmatpush3.bf16.msra.mxu1 %v2797_v22  ;;  %4528 = vmatprep.mubr.msk.bf16.mxu0 %vm618_vm1, %v5350_v21  ;;  %v293_v22 = vld [vmem:[%s4972_s9 + $0xc2] sm:$0xff]  ;;  %v294_v28 = vld [vmem:[%s4972_s9 + $0xca] sm:$0xff] }
  0xe4   : > { %v917_v42 = vpop.f32.mrf.mxu1  ;;  %4562 = vmatprep.mubr.msk.bf16.mxu1 %vm618_vm1, %v4999_v24  ;;  %4736 = vmatprep.subr.msk.bf16.mxu0 %vm667_vm0, %v5358_v9  ;;  %v5433_v41 = vpack.c.bf16 %v294_v28, %v293_v22 }
  0xe5   : > { %v5379_v44 = vadd.f32 %v917_v42, %v705_v35  ;;  %v4323_v46 = vpop.f32.mrf.mxu0  ;;  %4737 = vmatprep.subr.msk.bf16.mxu1 %vm667_vm0, %v5367_v33  ;;  %v5431_v35 = vpack.c.bf16 %v292_v16, %v291_v15 }
  0xe6   : > { %v4357_v52 = vpop.f32.mrf.mxu1 }
  0xe7   : > { %v5387_v54 = vadd.f32 %v4357_v52, %v4323_v46  ;;  %v708_v56 = vpop.f32.mrf.mxu0  ;;  %6369 = vst [vmem:[#allocation18_spill] sm:$0xff] %v5431_v35 }
  0xe8   : > { %v920_v57 = vpop.f32.mrf.mxu1 }
  0xe9   : > { %v5389_v58 = vadd.f32 %v920_v57, %v708_v56  ;;  %v4326_v59 = vpop.f32.mrf.mxu0  ;;  %4529 = vmatmul.mubr.msk.bf16.gmra.mxu0 %vm618_vm1, %v5381_v47 }
  0xea   : > { %v4360_v19 = vpop.f32.mrf.mxu1  ;;  %4563 = vmatmul.mubr.msk.bf16.gmra.mxu1 %vm618_vm1, %v5029_v36  ;;  %4532 = vmatprep.mubr.msk.bf16.mxu0 %vm618_vm1, %v5385_v53 }
  0xeb   : > { %v5399_v0 = vadd.f32 %v4360_v19, %v4326_v59  ;;  %v721_v1 = vpop.f32.mrf.mxu0  ;;  %4566 = vmatprep.mubr.msk.bf16.mxu1 %vm618_vm1, %v5035_v38  ;;  %v295_v19 = vld [vmem:[%s4972_s9 + $0xda] sm:$0xff] }
  0xec   : > { %v933_v5 = vpop.f32.mrf.mxu1 }
  0xed   : > { %v5405_v6 = vadd.f32 %v933_v5, %v721_v1  ;;  %v4327_v25 = vpop.f32.mrf.mxu0 }
  0xee   : > { %v4361_v39 = vpop.f32.mrf.mxu1 }
  0xef   : > { %v5411_v51 = vadd.f32 %v4361_v39, %v4327_v25  ;;  %v724_v61 = vpop.f32.mrf.mxu0 }
  0xf0   : > { %v936_v63 = vpop.f32.mrf.mxu1 }
  0xf1   : > { %v5413_v7 = vadd.f32 %v936_v63, %v724_v61  ;;  %v4330_v12 = vpop.f32.mrf.mxu0  ;;  %4533 = vmatmul.mubr.msk.bf16.gmra.mxu0 %vm618_vm1, %v5407_v37  ;;  %v5455_v61 = vpack.c.bf16 %v296_v26, %v295_v19 }
  0xf2   : > { %v4364_v13 = vpop.f32.mrf.mxu1  ;;  %4567 = vmatmul.mubr.msk.bf16.gmra.mxu1 %vm618_vm1, %v5055_v48  ;;  %4536 = vmatprep.mubr.msk.bf16.mxu0 %vm618_vm1, %v5409_v49 }
  0xf3   : > { %v5423_v17 = vadd.f32 %v4364_v13, %v4330_v12  ;;  %v737_v20 = vpop.f32.mrf.mxu0  ;;  %4570 = vmatprep.mubr.msk.bf16.mxu1 %vm618_vm1, %v5059_v50  ;;  %6374 = vst [vmem:[#allocation23_spill] sm:$0xff] %v5455_v61  ;;  %v5457_v12 = vpack.c.bf16 %v298_v4, %v297_v2 }
  0xf4   : > { %v949_v30 = vpop.f32.mrf.mxu1 }
  0xf5   : > { %v5429_v31 = vadd.f32 %v949_v30, %v737_v20  ;;  %v4331_v32 = vpop.f32.mrf.mxu0  ;;  %v299_v30 = vld [vmem:[%s4972_s9 + $0x10a] sm:$0xff] }
  0xf6   : > { %v4365_v40 = vpop.f32.mrf.mxu1 }
  0xf7   : > { %v5435_v42 = vadd.f32 %v4365_v40, %v4331_v32  ;;  %v740_v46 = vpop.f32.mrf.mxu0  ;;  %v300_v32 = vld [vmem:[%s4972_s9 + $0x112] sm:$0xff] }
  0xf8   : > { %v952_v52 = vpop.f32.mrf.mxu1 }
  0xf9   : > { %6370 = vst [vmem:[#allocation19_spill] sm:$0xff] %v5435_v42  ;;  %v5437_v56 = vadd.f32 %v952_v52, %v740_v46  ;;  %v4334_v57 = vpop.f32.mrf.mxu0  ;;  %4537 = vmatmul.mubr.msk.bf16.gmra.mxu0 %vm618_vm1, %v5431_v35  ;;  %v301_v52 = vld [vmem:[%s4972_s9 + $0x122] sm:$0xff] }
  0xfa   : > { %v4368_v59 = vpop.f32.mrf.mxu1  ;;  %4571 = vmatmul.mubr.msk.bf16.gmra.mxu1 %vm618_vm1, %v5079_v60  ;;  %4540 = vmatprep.mubr.msk.bf16.mxu0 %vm618_vm1, %v5433_v41 }
  0xfb   : > { %6371 = vst [vmem:[#allocation20_spill] sm:$0xff] %v5437_v56  ;;  %v5447_v27 = vadd.f32 %v4368_v59, %v4334_v57  ;;  %v753_v1 = vpop.f32.mrf.mxu0  ;;  %4574 = vmatprep.mubr.msk.bf16.mxu1 %vm618_vm1, %v5083_v62  ;;  %v302_v57 = vld [vmem:[%s4972_s9 + $0x12a] sm:$0xff] }
  0xfc   : > { %v965_v5 = vpop.f32.mrf.mxu1  ;;  %v5481_v4 = vpack.c.bf16 %v302_v57, %v301_v52  ;;  %v305_v52 = vld [vmem:[%s4972_s9 + $0x152] sm:$0xff]  ;;  %v306_v57 = vld [vmem:[%s4972_s9 + $0x15a] sm:$0xff] }
  0xfd   : > { %6372 = vst [vmem:[#allocation21_spill] sm:$0xff] %v5447_v27  ;;  %v5453_v25 = vadd.f32 %v965_v5, %v753_v1  ;;  %v4335_v39 = vpop.f32.mrf.mxu0  ;;  %v5479_v1 = vpack.c.bf16 %v300_v32, %v299_v30  ;;  %v304_v30 = vld [vmem:[%s4972_s9 + $0x142] sm:$0xff]  ;;  %v5505_v10 = vpack.c.bf16 %v306_v57, %v305_v52 }
  0xfe   : > { %v4369_v63 = vpop.f32.mrf.mxu1  ;;  %6380 = vst [vmem:[#allocation29_spill] sm:$0xff] %v5481_v4 }
  0xff   : > { %6373 = vst [vmem:[#allocation22_spill] sm:$0xff] %v5453_v25  ;;  %v5459_v13 = vadd.f32 %v4369_v63, %v4335_v39  ;;  %v756_v15 = vpop.f32.mrf.mxu0  ;;  %6379 = vst [vmem:[#allocation28_spill] sm:$0xff] %v5479_v1 }
 0x100   : > { %v968_v16 = vpop.f32.mrf.mxu1  ;;  %6386 = vst [vmem:[#allocation35_spill] sm:$0xff] %v5505_v10 }
 0x101   : > { %6375 = vst [vmem:[#allocation24_spill] sm:$0xff] %v5459_v13  ;;  %v5461_v20 = vadd.f32 %v968_v16, %v756_v15  ;;  %v4338_v22 = vpop.f32.mrf.mxu0  ;;  %4541 = vmatmul.mubr.msk.bf16.gmra.mxu0 %vm618_vm1, %v5455_v61 }
 0x102   : > { %v4372_v28 = vpop.f32.mrf.mxu1  ;;  %4575 = vmatmul.mubr.msk.bf16.gmra.mxu1 %vm618_vm1, %v5103_v8  ;;  %4544 = vmatprep.mubr.msk.bf16.mxu0 %vm618_vm1, %v5457_v12 }
 0x103   : > { %6376 = vst [vmem:[#allocation25_spill] sm:$0xff] %v5461_v20  ;;  %v5471_v40 = vadd.f32 %v4372_v28, %v4338_v22  ;;  %v769_v46 = vpop.f32.mrf.mxu0  ;;  %4578 = vmatprep.mubr.msk.bf16.mxu1 %vm618_vm1, %v5107_v11  ;;  %v303_v28 = vld [vmem:[%s4972_s9 + $0x13a] sm:$0xff] }
 0x104   : > { %v981_v59 = vpop.f32.mrf.mxu1 }
 0x105   : > { %6377 = vst [vmem:[#allocation26_spill] sm:$0xff] %v5471_v40  ;;  %v5477_v19 = vadd.f32 %v981_v59, %v769_v46  ;;  %v4339_v26 = vpop.f32.mrf.mxu0 }
 0x106   : > { %v4373_v2 = vpop.f32.mrf.mxu1 }
 0x107   : > { %6378 = vst [vmem:[#allocation27_spill] sm:$0xff] %v5477_v19  ;;  %v5483_v5 = vadd.f32 %v4373_v2, %v4339_v26  ;;  %v772_v39 = vpop.f32.mrf.mxu0 }
 0x108   : > { %v984_v63 = vpop.f32.mrf.mxu1 }
 0x109   : > { %6381 = vst [vmem:[#allocation30_spill] sm:$0xff] %v5483_v5  ;;  %v5485_v15 = vadd.f32 %v984_v63, %v772_v39  ;;  %v4342_v16 = vpop.f32.mrf.mxu0  ;;  %4545 = vmatmul.mubr.msk.bf16.gmra.mxu0 %vm618_vm1, %v5479_v1  ;;  %v5503_v39 = vpack.c.bf16 %v304_v30, %v303_v28  ;;  %v307_v28 = vld [vmem:[%s4972_s9 + $0x16a] sm:$0xff]  ;;  %v308_v30 = vld [vmem:[%s4972_s9 + $0x172] sm:$0xff] }
 0x10a   : > { %v4376_v22 = vpop.f32.mrf.mxu1  ;;  %4579 = vmatmul.mubr.msk.bf16.gmra.mxu1 %vm618_vm1, %v5127_v23  ;;  %4548 = vmatprep.mubr.msk.bf16.mxu0 %vm618_vm1, %v5481_v4 }
 0x10b   : > { %6382 = vst [vmem:[#allocation31_spill] sm:$0xff] %v5485_v15  ;;  %v5495_v32 = vadd.f32 %v4376_v22, %v4342_v16  ;;  %v785_v46 = vpop.f32.mrf.mxu0  ;;  %4582 = vmatprep.mubr.msk.bf16.mxu1 %vm618_vm1, %v5131_v29  ;;  %6385 = vst [vmem:[#allocation34_spill] sm:$0xff] %v5503_v39 }
 0x10c   : > { %v997_v59 = vpop.f32.mrf.mxu1 }
 0x10d   : > { %6383 = vst [vmem:[#allocation32_spill] sm:$0xff] %v5495_v32  ;;  %v5501_v26 = vadd.f32 %v997_v59, %v785_v46  ;;  %v4343_v2 = vpop.f32.mrf.mxu0 }
 0x10e   : > { %v4377_v63 = vpop.f32.mrf.mxu1 }
 0x10f   : > { %6384 = vst [vmem:[#allocation33_spill] sm:$0xff] %v5501_v26  ;;  %v5507_v15 = vadd.f32 %v4377_v63, %v4343_v2  ;;  %v788_v16 = vpop.f32.mrf.mxu0  ;;  %v5525_v63 = vpack.c.bf16 %v308_v30, %v307_v28 }
 0x110   : > { %v1000_v22 = vpop.f32.mrf.mxu1 }
 0x111   : > { %6387 = vst [vmem:[#allocation36_spill] sm:$0xff] %v5507_v15  ;;  %v5509_v32 = vadd.f32 %v1000_v22, %v788_v16  ;;  %v4346_v5 = vpop.f32.mrf.mxu0  ;;  %4549 = vmatmul.mubr.msk.bf16.gmra.mxu0 %vm618_vm1, %v5503_v39  ;;  %6391 = vst [vmem:[#allocation40_spill] sm:$0xff] %v5525_v63 }
 0x112   : > { %v4380_v19 = vpop.f32.mrf.mxu1  ;;  %4583 = vmatmul.mubr.msk.bf16.gmra.mxu1 %vm618_vm1, %v5151_v43  ;;  %4552 = vmatprep.mubr.msk.bf16.mxu0 %vm618_vm1, %v5505_v10 }
 0x113   : > { %6388 = vst [vmem:[#allocation37_spill] sm:$0xff] %v5509_v32  ;;  %v5519_v46 = vadd.f32 %v4380_v19, %v4346_v5  ;;  %v801_v52 = vpop.f32.mrf.mxu0  ;;  %4586 = vmatprep.mubr.msk.bf16.mxu1 %vm618_vm1, %v5155_v45 }
 0x114   : > { %v1013_v57 = vpop.f32.mrf.mxu1 }
 0x115   : > { %6389 = vst [vmem:[#allocation38_spill] sm:$0xff] %v5519_v46  ;;  %v5523_v59 = vadd.f32 %v1013_v57, %v801_v52  ;;  %v4347_v2 = vpop.f32.mrf.mxu0 }
 0x116   : > { %v4381_v16 = vpop.f32.mrf.mxu1 }
 0x117   : > { %6390 = vst [vmem:[#allocation39_spill] sm:$0xff] %v5523_v59  ;;  %v5527_v22 = vadd.f32 %v4381_v16, %v4347_v2  ;;  %v804_v32 = vpop.f32.mrf.mxu0  ;;  %v2995_v16 = vsel %vm667_vm0, %v5358_v9, 0 }
 0x118   : > { %v1016_v15 = vpop.f32.mrf.mxu1 }
 0x119   : > { %6392 = vst [vmem:[#allocation41_spill] sm:$0xff] %v5527_v22  ;;  %v5529_v26 = vadd.f32 %v1016_v15, %v804_v32  ;;  %v4350_v40 = vpop.f32.mrf.mxu0  ;;  %4553 = vmatmul.mubr.msk.bf16.gmra.mxu0 %vm618_vm1, %v5525_v63 }
 0x11a   : > { %v4384_v19 = vpop.f32.mrf.mxu1  ;;  %4587 = vmatmul.mubr.msk.bf16.gmra.mxu1 %vm618_vm1, %v5171_v55  ;;  %4592 = vmatprep.mubr.msk.bf16.mxu0 %vm618_vm1, %v4982_v14  ;;  %v3241_v14 = vsel %vm667_vm0, %v5367_v33, 0 }
 0x11b   : > { %6393 = vst [vmem:[#allocation42_spill] sm:$0xff] %v5529_v26  ;;  %v5537_v5 = vadd.f32 %v4384_v19, %v4350_v40  ;;  %v817_v28 = vpop.f32.mrf.mxu0  ;;  %4626 = vmatprep.mubr.msk.bf16.mxu1 %vm618_vm1, %v5347_v18 }
 0x11c   : > { %v1029_v30 = vpop.f32.mrf.mxu1 }
 0x11d   : > { %6394 = vst [vmem:[#allocation43_spill] sm:$0xff] %v5537_v5  ;;  %v5541_v15 = vadd.f32 %v1029_v30, %v817_v28  ;;  %v4351_v32 = vpop.f32.mrf.mxu0 }
 0x11e   : > { %v4385_v52 = vpop.f32.mrf.mxu1 }
 0x11f   : > { %6395 = vst [vmem:[#allocation44_spill] sm:$0xff] %v5541_v15  ;;  %v5543_v57 = vadd.f32 %v4385_v52, %v4351_v32  ;;  %v820_v2 = vpop.f32.mrf.mxu0 }
 0x120   : > { %v1032_v26 = vpop.f32.mrf.mxu1 }
 0x121   : > { %6396 = vst [vmem:[#allocation45_spill] sm:$0xff] %v5543_v57  ;;  %v5549_v40 = vadd.f32 %v1032_v26, %v820_v2  ;;  %v5551_v19 = vpop.f32.mrf.mxu0  ;;  %4593 = vmatmul.mubr.msk.bf16.vlgmr.msra.gmra.mxu0 %vm618_vm1, %v4999_v24 }
 0x122   : > { %v5555_v18 = vpop.f32.mrf.mxu1  ;;  %4627 = vmatmul.mubr.msk.bf16.vlgmr.msra.gmra.mxu1 %vm618_vm1, %v5350_v21  ;;  %4659 = vmatpush3.bf16.msra.mxu0 %v2995_v16 }
 0x123   : > { %6397 = vst [vmem:[#allocation46_spill] sm:$0xff] %v5549_v40  ;;  %v5559_v28 = vpop.f32.mrf.mxu0  ;;  %4693 = vmatpush3.bf16.msra.mxu1 %v3241_v14  ;;  %4596 = vmatprep.mubr.msk.bf16.mxu0 %vm618_vm1, %v5029_v36 }
 0x124   : > { %v5563_v9 = vpop.f32.mrf.mxu1  ;;  %4630 = vmatprep.mubr.msk.bf16.mxu1 %vm618_vm1, %v5381_v47 }
 0x125   : > { %v5567_v33 = vpop.f32.mrf.mxu0 }
 0x126   : > { %v5569_v26 = vpop.f32.mrf.mxu1 }
 0x127   : > { %v5571_v30 = vpop.f32.mrf.mxu0 }
 0x128   : > { %v5573_v32 = vpop.f32.mrf.mxu1 }
 0x129   : > { %v5575_v52 = vpop.f32.mrf.mxu0  ;;  %4597 = vmatmul.mubr.msk.bf16.gmra.mxu0 %vm618_vm1, %v5035_v38 }
 0x12a   : > { %v5579_v2 = vpop.f32.mrf.mxu1  ;;  %4631 = vmatmul.mubr.msk.bf16.gmra.mxu1 %vm618_vm1, %v5385_v53  ;;  %4600 = vmatprep.mubr.msk.bf16.mxu0 %vm618_vm1, %v5055_v48 }
 0x12b   : > { %v5585_v16 = vpop.f32.mrf.mxu0  ;;  %4634 = vmatprep.mubr.msk.bf16.mxu1 %vm618_vm1, %v5407_v37 }
 0x12c   : > { %v5589_v14 = vpop.f32.mrf.mxu1 }
 0x12d   : > { %v5591_v40 = vpop.f32.mrf.mxu0 }
 0x12e   : > { %v5593_v57 = vpop.f32.mrf.mxu1 }
 0x12f   : > { %v5595_v15 = vpop.f32.mrf.mxu0 }
 0x130   : > { %v5597_v5 = vpop.f32.mrf.mxu1 }
 0x131   : > { %v5599_v22 = vpop.f32.mrf.mxu0  ;;  %4601 = vmatmul.mubr.msk.bf16.gmra.mxu0 %vm618_vm1, %v5059_v50 }
 0x132   : > { %v5603_v59 = vpop.f32.mrf.mxu1  ;;  %4635 = vmatmul.mubr.msk.bf16.gmra.mxu1 %vm618_vm1, %v5409_v49  ;;  %4604 = vmatprep.mubr.msk.bf16.mxu0 %vm618_vm1, %v5079_v60 }
 0x133   : > { %v5609_v46 = vpop.f32.mrf.mxu0  ;;  %4638 = vmatprep.mubr.msk.bf16.mxu1 %vm618_vm1, %v5431_v35 }
 0x134   : > { %v5613_v20 = vpop.f32.mrf.mxu1 }
 0x135   : > { %6398 = vst [vmem:[#allocation47_spill] sm:$0xff] %v5613_v20  ;;  %v5615_v13 = vpop.f32.mrf.mxu0 }
 0x136   : > { %v5617_v25 = vpop.f32.mrf.mxu1 }
 0x137   : > { %6399 = vst [vmem:[#allocation48_spill] sm:$0xff] %v5617_v25  ;;  %v5619_v27 = vpop.f32.mrf.mxu0 }
 0x138   : > { %v5621_v56 = vpop.f32.mrf.mxu1 }
 0x139   : > { %6400 = vst [vmem:[#allocation49_spill] sm:$0xff] %v5621_v56  ;;  %v5623_v42 = vpop.f32.mrf.mxu0  ;;  %4605 = vmatmul.mubr.msk.bf16.gmra.mxu0 %vm618_vm1, %v5083_v62 }
 0x13a   : > { %6401 = vst [vmem:[#allocation50_spill] sm:$0xff] %v5623_v42  ;;  %v5627_v60 = vpop.f32.mrf.mxu1  ;;  %4639 = vmatmul.mubr.msk.bf16.gmra.mxu1 %vm618_vm1, %v5433_v41  ;;  %4608 = vmatprep.mubr.msk.bf16.mxu0 %vm618_vm1, %v5103_v8 }
 0x13b   : > { %6402 = vst [vmem:[#allocation51_spill] sm:$0xff] %v5627_v60  ;;  %v5633_v20 = vpop.f32.mrf.mxu0  ;;  %4642 = vmatprep.mubr.msk.bf16.mxu1 %vm618_vm1, %v5455_v61 }
 0x13c   : > { %v5637_v25 = vpop.f32.mrf.mxu1 }
 0x13d   : > { %v5639_v56 = vpop.f32.mrf.mxu0 }
 0x13e   : > { %v5641_v42 = vpop.f32.mrf.mxu1 }
 0x13f   : > { %6403 = vst [vmem:[#allocation52_spill] sm:$0xff] %v5641_v42  ;;  %v5643_v62 = vpop.f32.mrf.mxu0 }
 0x140   : > { %6404 = vst [vmem:[#allocation53_spill] sm:$0xff] %v5643_v62  ;;  %v5645_v60 = vpop.f32.mrf.mxu1 }
 0x141   : > { %6405 = vst [vmem:[#allocation54_spill] sm:$0xff] %v5645_v60  ;;  %v5647_v35 = vpop.f32.mrf.mxu0  ;;  %4609 = vmatmul.mubr.msk.bf16.gmra.mxu0 %vm618_vm1, %v5107_v11 }
 0x142   : > { %6406 = vst [vmem:[#allocation55_spill] sm:$0xff] %v5647_v35  ;;  %v5651_v8 = vpop.f32.mrf.mxu1  ;;  %4643 = vmatmul.mubr.msk.bf16.gmra.mxu1 %vm618_vm1, %v5457_v12  ;;  %4612 = vmatprep.mubr.msk.bf16.mxu0 %vm618_vm1, %v5127_v23 }
 0x143   : > { %6407 = vst [vmem:[#allocation56_spill] sm:$0xff] %v5651_v8  ;;  %v5657_v61 = vpop.f32.mrf.mxu0  ;;  %4646 = vmatprep.mubr.msk.bf16.mxu1 %vm618_vm1, %v5479_v1 }
 0x144   : > { %v5661_v62 = vpop.f32.mrf.mxu1 }
 0x145   : > { %v5663_v60 = vpop.f32.mrf.mxu0 }
 0x146   : > { %v5665_v35 = vpop.f32.mrf.mxu1 }
 0x147   : > { %6408 = vst [vmem:[#allocation57_spill] sm:$0xff] %v5665_v35  ;;  %v5667_v11 = vpop.f32.mrf.mxu0 }
 0x148   : > { %v5669_v8 = vpop.f32.mrf.mxu1 }
 0x149   : > { %6409 = vst [vmem:[#allocation58_spill] sm:$0xff] %v5669_v8  ;;  %v5671_v42 = vpop.f32.mrf.mxu0  ;;  %4613 = vmatmul.mubr.msk.bf16.gmra.mxu0 %vm618_vm1, %v5131_v29 }
 0x14a   : > { %6410 = vst [vmem:[#allocation59_spill] sm:$0xff] %v5671_v42  ;;  %v5675_v23 = vpop.f32.mrf.mxu1  ;;  %4647 = vmatmul.mubr.msk.bf16.gmra.mxu1 %vm618_vm1, %v5481_v4  ;;  %4616 = vmatprep.mubr.msk.bf16.mxu0 %vm618_vm1, %v5151_v43 }
 0x14b   : > { %6411 = vst [vmem:[#allocation60_spill] sm:$0xff] %v5675_v23  ;;  %v5681_v35 = vpop.f32.mrf.mxu0  ;;  %4650 = vmatprep.mubr.msk.bf16.mxu1 %vm618_vm1, %v5503_v39 }
 0x14c   : > { %v5685_v8 = vpop.f32.mrf.mxu1 }
 0x14d   : > { %6412 = vst [vmem:[#allocation61_spill] sm:$0xff] %v5685_v8  ;;  %v5687_v42 = vpop.f32.mrf.mxu0 }
 0x14e   : > { %v5689_v29 = vpop.f32.mrf.mxu1 }
 0x14f   : > { %6413 = vst [vmem:[#allocation62_spill] sm:$0xff] %v5689_v29  ;;  %v5691_v23 = vpop.f32.mrf.mxu0  ;;  %v3805_v29 = vld [vmem:[%s4972_s9 + $0x182] sm:$0xff] }
 0x150   : > { %6414 = vst [vmem:[#allocation63_spill] sm:$0xff] %v5691_v23  ;;  %v5693_v1 = vpop.f32.mrf.mxu1 }
 0x151   : > { %6415 = vst [vmem:[#allocation64_spill] sm:$0xff] %v5693_v1  ;;  %v5695_v4 = vpop.f32.mrf.mxu0  ;;  %4617 = vmatmul.mubr.msk.bf16.gmra.mxu0 %vm618_vm1, %v5155_v45  ;;  %v3806_v1 = vld [vmem:[%s4972_s9 + $0x18a] sm:$0xff] }
 0x152   : > { %6416 = vst [vmem:[#allocation65_spill] sm:$0xff] %v5695_v4  ;;  %v5699_v43 = vpop.f32.mrf.mxu1  ;;  %4651 = vmatmul.mubr.msk.bf16.gmra.mxu1 %vm618_vm1, %v5505_v10  ;;  %4620 = vmatprep.mubr.msk.bf16.mxu0 %vm618_vm1, %v5171_v55 }
 0x153   : > { %6417 = vst [vmem:[#allocation66_spill] sm:$0xff] %v5699_v43  ;;  %v5705_v39 = vpop.f32.mrf.mxu0  ;;  %4654 = vmatprep.mubr.msk.bf16.mxu1 %vm618_vm1, %v5525_v63  ;;  %v5717_v43 = vpack.c.bf16 %v3806_v1, %v3805_v29  ;;  %v1260_v29 = vadd.f32 %v5551_v19, %v5369_v34 }
 0x154   : > { %v5711_v23 = vpop.f32.mrf.mxu1 }
 0x155   : > { %v5713_v4 = vpop.f32.mrf.mxu0 }
 0x156   : > { %v5715_v45 = vpop.f32.mrf.mxu1 }
 0x157   : > { %6418 = vst [vmem:[#allocation67_spill] sm:$0xff] %v5715_v45  ;;  %v5719_v10 = vpop.f32.mrf.mxu0 }
 0x158   : > { %v5721_v8 = vpop.f32.mrf.mxu1 }
 0x159   : > { %6419 = vst [vmem:[#allocation68_spill] sm:$0xff] %v5721_v8  ;;  %v5723_v55 = vpop.f32.mrf.mxu0  ;;  %4621 = vmatmul.mubr.msk.bf16.gmra.mxu0 %vm618_vm1, %v5255_v3 }
 0x15a   : > { %6420 = vst [vmem:[#allocation69_spill] sm:$0xff] %v5723_v55  ;;  %v5727_v63 = vpop.f32.mrf.mxu1  ;;  %4655 = vmatmul.mubr.msk.bf16.gmra.mxu1 %vm618_vm1, %v5717_v43  ;;  %4660 = vmatprep.mubr.msk.bf16.mxu0 %vm618_vm1, %v4999_v24 }
 0x15b   : > { %6421 = vst [vmem:[#allocation70_spill] sm:$0xff] %v5727_v63  ;;  %v5733_v45 = vpop.f32.mrf.mxu0  ;;  %4694 = vmatprep.mubr.msk.bf16.mxu1 %vm618_vm1, %v5350_v21  ;;  %v1258_v63 = vadd.f32 %v5559_v28, %v5379_v44  ;;  %v1261_v21 = vadd.f32 %v5567_v33, %v5387_v54  ;;  %v1259_v44 = vadd.f32 %v5571_v30, %v5389_v58 }
 0x15c   : > { %6422 = vst [vmem:[#allocation71_spill] sm:$0xff] %v5733_v45  ;;  %v5739_v1 = vpop.f32.mrf.mxu1  ;;  %v1506_v45 = vadd.f32 %v5555_v18, %v1260_v29 }
 0x15d   : > { %6423 = vst [vmem:[#allocation72_spill] sm:$0xff] %v5739_v1  ;;  %v5741_v8 = vpop.f32.mrf.mxu0  ;;  %v1504_v1 = vadd.f32 %v5563_v9, %v1258_v63  ;;  %v1507_v18 = vadd.f32 %v5569_v26, %v1261_v21  ;;  %v1505_v33 = vadd.f32 %v5573_v32, %v1259_v44  ;;  %v1263_v32 = vadd.f32 %v5595_v15, %v5413_v7 }
 0x15e   : > { %v5748_v55 = vpop.f32.mrf.mxu1 }
 0x15f   : > { %6424 = vst [vmem:[#allocation73_spill] sm:$0xff] %v5748_v55  ;;  %v5750_v24 = vpop.f32.mrf.mxu0 }
 0x160   : > { %v5755_v34 = vpop.f32.mrf.mxu1 }
 0x161   : > { %v4458_v19 = vpop.f32.mrf.mxu0  ;;  %4661 = vmatmul.mubr.msk.bf16.vlgmr.msra.gmra.mxu0 %vm618_vm1, %v5029_v36  ;;  %v1264_v36 = vadd.f32 %v5575_v52, %v5399_v0 }
 0x162   : > { %v1752_v28 = vadd.f32 %v4458_v19, %v1506_v45  ;;  %v4492_v55 = vpop.f32.mrf.mxu1  ;;  %4695 = vmatmul.mubr.msk.bf16.vlgmr.msra.gmra.mxu1 %vm618_vm1, %v5381_v47  ;;  %4664 = vmatprep.mubr.msk.bf16.mxu0 %vm618_vm1, %v5035_v38  ;;  %v1262_v47 = vadd.f32 %v5585_v16, %v5405_v6  ;;  %v1265_v6 = vadd.f32 %v5591_v40, %v5411_v51 }
 0x163   : > { %v1623_v54 = vpop.f32.mrf.mxu0  ;;  %4698 = vmatprep.mubr.msk.bf16.mxu1 %vm618_vm1, %v5385_v53  ;;  %v1268_v16 = vadd.f32 %v5599_v22, %v5423_v17 }
 0x164   : > { %v1998_v63 = vadd.f32 %v4492_v55, %v1752_v28  ;;  %v1750_v9 = vadd.f32 %v1623_v54, %v1504_v1  ;;  %v1869_v58 = vpop.f32.mrf.mxu1  ;;  %v1510_v55 = vadd.f32 %v5579_v2, %v1264_v36  ;;  %v1508_v2 = vadd.f32 %v5589_v14, %v1262_v47  ;;  %v6426_v47 = vld [vmem:[#allocation20_spill] sm:$0xff] }
 0x165   : > { %v4459_v45 = vpop.f32.mrf.mxu0  ;;  %v1511_v14 = vadd.f32 %v5593_v57, %v1265_v6  ;;  %v1509_v28 = vadd.f32 %v5597_v5, %v1263_v32  ;;  %v1267_v57 = vadd.f32 %v5619_v27, %v6426_v47  ;;  %v6427_v6 = vld [vmem:[#allocation8_spill] sm:$0xff] }
 0x166   : > { %2030 = vst [vmem:[%s5775_s11 + $0x20] sm:$0xff] %v1998_v63  ;;  %v1996_v38 = vadd.f32 %v1869_v58, %v1750_v9  ;;  %v1753_v53 = vadd.f32 %v4459_v45, %v1507_v18  ;;  %v4493_v26 = vpop.f32.mrf.mxu1  ;;  %v2100_v54 = vmul.f32 %v1998_v63, %v1998_v63  ;;  %v1266_v58 = vadd.f32 %v5609_v46, %v5429_v31  ;;  %v6425_v45 = vld [vmem:[#allocation19_spill] sm:$0xff] }
 0x167   : > { %v1626_v30 = vpop.f32.mrf.mxu0 }
 0x168   : > { %2028 = vst [vmem:[%s5775_s11] sm:$0xff] %v1996_v38  ;;  %v1999_v0 = vadd.f32 %v4493_v26, %v1753_v53  ;;  %v1751_v52 = vadd.f32 %v1626_v30, %v1505_v33  ;;  %v1872_v29 = vpop.f32.mrf.mxu1  ;;  %v2098_v51 = vmul.f32 %v1996_v38, %v1996_v38  ;;  %v1269_v33 = vadd.f32 %v5615_v13, %v6425_v45 }
 0x169   : > { %v4462_v1 = vpop.f32.mrf.mxu0  ;;  %4665 = vmatmul.mubr.msk.bf16.gmra.mxu0 %vm618_vm1, %v5055_v48 }
 0x16a   : > { %2031 = vst [vmem:[%s5775_s11 + $0x30] sm:$0xff] %v1999_v0  ;;  %v1997_v21 = vadd.f32 %v1872_v29, %v1751_v52  ;;  %v1756_v19 = vadd.f32 %v4462_v1, %v1510_v55  ;;  %v4496_v44 = vpop.f32.mrf.mxu1  ;;  %4699 = vmatmul.mubr.msk.bf16.gmra.mxu1 %vm618_vm1, %v5407_v37  ;;  %4668 = vmatprep.mubr.msk.bf16.mxu0 %vm618_vm1, %v5059_v50  ;;  %v6429_v1 = vld [vmem:[#allocation47_spill] sm:$0xff] }
 0x16b   : > { %v1639_v7 = vpop.f32.mrf.mxu0  ;;  %4702 = vmatprep.mubr.msk.bf16.mxu1 %vm618_vm1, %v5409_v49  ;;  %v1514_v37 = vadd.f32 %v5603_v59, %v1268_v16  ;;  %v2101_v53 = vmul.f32 %v1999_v0, %v1999_v0  ;;  %v6428_v16 = vld [vmem:[#allocation18_spill] sm:$0xff] }
 0x16c   : > { %2029 = vst [vmem:[%s5775_s11 + $0x10] sm:$0xff] %v1997_v21  ;;  %v2060_v48 = vadd.f32 %v1997_v21, %v1996_v38  ;;  %v2099_v17 = vmul.f32 %v1997_v21, %v1997_v21  ;;  %v2002_v22 = vadd.f32 %v4496_v44, %v1756_v19  ;;  %v1754_v15 = vadd.f32 %v1639_v7, %v1508_v2  ;;  %v1885_v40 = vpop.f32.mrf.mxu1  ;;  %v6430_v2 = vld [vmem:[#allocation48_spill] sm:$0xff]  ;;  %v6431_v19 = vld [vmem:[#allocation49_spill] sm:$0xff] }
 0x16d   : > { %v4463_v50 = vpop.f32.mrf.mxu0  ;;  %v1515_v21 = vadd.f32 %v6430_v2, %v1269_v33  ;;  %v1513_v44 = vadd.f32 %v6431_v19, %v1267_v57  ;;  %v6432_v7 = vld [vmem:[#allocation9_spill] sm:$0xff]  ;;  %v6444_v19 = vld [vmem:[#allocation55_spill] sm:$0xff] }
 0x16e   : > { %v2061_v18 = vadd.f32 %v2060_v48, %v1998_v63  ;;  %v2130_v36 = vadd.f32 %v2099_v17, %v2098_v51  ;;  %2034 = vst [vmem:[%s5775_s11 + $0x60] sm:$0xff] %v2002_v22  ;;  %v2000_v9 = vadd.f32 %v1885_v40, %v1754_v15  ;;  %v4497_v49 = vpop.f32.mrf.mxu1  ;;  %v1757_v5 = vadd.f32 %v4463_v50, %v1511_v14  ;;  %v6442_v2 = vld [vmem:[#allocation53_spill] sm:$0xff] }
 0x16f   : > { %v1642_v38 = vpop.f32.mrf.mxu0  ;;  %v2104_v45 = vmul.f32 %v2002_v22, %v2002_v22 }
 0x170   : > { %v2131_v59 = vadd.f32 %v2130_v36, %v2100_v54  ;;  %2032 = vst [vmem:[%s5775_s11 + $0x40] sm:$0xff] %v2000_v9  ;;  %v2062_v26 = vadd.f32 %v2061_v18, %v1999_v0  ;;  %v1755_v63 = vadd.f32 %v1642_v38, %v1509_v28  ;;  %v1888_v30 = vpop.f32.mrf.mxu1  ;;  %v2102_v55 = vmul.f32 %v2000_v9, %v2000_v9  ;;  %v6433_v28 = vld [vmem:[#allocation21_spill] sm:$0xff]  ;;  %v6435_v54 = vld [vmem:[#allocation22_spill] sm:$0xff]  ;;  %v6436_v36 = vld [vmem:[#allocation24_spill] sm:$0xff] }
 0x171   : > { %v2003_v52 = vadd.f32 %v4497_v49, %v1757_v5  ;;  %v4466_v29 = vpop.f32.mrf.mxu0  ;;  %4669 = vmatmul.mubr.msk.bf16.gmra.mxu0 %vm618_vm1, %v6427_v6  ;;  %v1512_v0 = vadd.f32 %v6429_v1, %v1266_v58  ;;  %v1270_v18 = vadd.f32 %v5633_v20, %v6435_v54  ;;  %v6438_v6 = vld [vmem:[#allocation52_spill] sm:$0xff]  ;;  %v6440_v1 = vld [vmem:[#allocation23_spill] sm:$0xff] }
 0x172   : > { %v2063_v31 = vadd.f32 %v2062_v26, %v2000_v9  ;;  %v2132_v13 = vadd.f32 %v2131_v59, %v2101_v53  ;;  %v2001_v46 = vadd.f32 %v1888_v30, %v1755_v63  ;;  %v1760_v27 = vadd.f32 %v4466_v29, %v1514_v37  ;;  %v4500_v32 = vpop.f32.mrf.mxu1  ;;  %4703 = vmatmul.mubr.msk.bf16.gmra.mxu1 %vm618_vm1, %v6428_v16  ;;  %v6434_v37 = vld [vmem:[#allocation50_spill] sm:$0xff] }
 0x173   : > { %2035 = vst [vmem:[%s5775_s11 + $0x70] sm:$0xff] %v2003_v52  ;;  %v1655_v51 = vpop.f32.mrf.mxu0  ;;  %4672 = vmatprep.mubr.msk.bf16.mxu0 %vm618_vm1, %v6432_v7  ;;  %4706 = vmatprep.mubr.msk.bf16.mxu1 %vm618_vm1, %v5433_v41  ;;  %v1272_v50 = vadd.f32 %v6434_v37, %v6433_v28  ;;  %v1273_v9 = vadd.f32 %v5639_v56, %v6436_v36 }
 0x174   : > { %v2133_v48 = vadd.f32 %v2132_v13, %v2102_v55  ;;  %2033 = vst [vmem:[%s5775_s11 + $0x50] sm:$0xff] %v2001_v46  ;;  %v2064_v17 = vadd.f32 %v2063_v31, %v2001_v46  ;;  %v2103_v15 = vmul.f32 %v2001_v46, %v2001_v46  ;;  %v2006_v40 = vadd.f32 %v4500_v32, %v1760_v27  ;;  %v1901_v14 = vpop.f32.mrf.mxu1  ;;  %v6437_v55 = vld [vmem:[#allocation51_spill] sm:$0xff]  ;;  %v6439_v13 = vld [vmem:[#allocation10_spill] sm:$0xff] }
 0x175   : > { %v1758_v49 = vadd.f32 %v1655_v51, %v1512_v0  ;;  %v4467_v58 = vpop.f32.mrf.mxu0  ;;  %v2105_v5 = vmul.f32 %v2003_v52, %v2003_v52  ;;  %v1518_v56 = vadd.f32 %v6437_v55, %v1272_v50  ;;  %v1516_v29 = vadd.f32 %v5637_v25, %v1270_v18  ;;  %v6441_v0 = vld [vmem:[#allocation25_spill] sm:$0xff]  ;;  %v6446_v50 = vld [vmem:[#allocation27_spill] sm:$0xff] }
 0x176   : > { %v2065_v33 = vadd.f32 %v2064_v17, %v2002_v22  ;;  %v2134_v41 = vadd.f32 %v2133_v48, %v2103_v15  ;;  %2038 = vst [vmem:[%s5775_s11 + $0xa0] sm:$0xff] %v2006_v40  ;;  %v1761_v47 = vadd.f32 %v4467_v58, %v1515_v21  ;;  %v4501_v57 = vpop.f32.mrf.mxu1  ;;  %v1519_v22 = vadd.f32 %v6438_v6, %v1273_v9  ;;  %v6443_v21 = vld [vmem:[#allocation26_spill] sm:$0xff]  ;;  %v6445_v48 = vld [vmem:[#allocation11_spill] sm:$0xff] }
 0x177   : > { %v2004_v38 = vadd.f32 %v1901_v14, %v1758_v49  ;;  %v1658_v53 = vpop.f32.mrf.mxu0  ;;  %v1271_v25 = vadd.f32 %v6442_v2, %v6441_v0  ;;  %v1274_v54 = vadd.f32 %v5657_v61, %v6446_v50  ;;  %v2108_v18 = vmul.f32 %v2006_v40, %v2006_v40  ;;  %v6455_v0 = vld [vmem:[#allocation29_spill] sm:$0xff]  ;;  %v6456_v2 = vld [vmem:[#allocation32_spill] sm:$0xff] }
 0x178   : > { %v2135_v59 = vadd.f32 %v2134_v41, %v2104_v45  ;;  %v2066_v26 = vadd.f32 %v2065_v33, %v2003_v52  ;;  %v2007_v63 = vadd.f32 %v4501_v57, %v1761_v47  ;;  %v1759_v20 = vadd.f32 %v1658_v53, %v1513_v44  ;;  %v1904_v30 = vpop.f32.mrf.mxu1  ;;  %v6448_v57 = vld [vmem:[#allocation56_spill] sm:$0xff] }
 0x179   : > { %2036 = vst [vmem:[%s5775_s11 + $0x80] sm:$0xff] %v2004_v38  ;;  %v4470_v31 = vpop.f32.mrf.mxu0  ;;  %4673 = vmatmul.mubr.msk.bf16.gmra.mxu0 %vm618_vm1, %v6439_v13  ;;  %v2106_v27 = vmul.f32 %v2004_v38, %v2004_v38  ;;  %v1276_v44 = vadd.f32 %v6444_v19, %v6443_v21  ;;  %v1520_v55 = vadd.f32 %v5661_v62, %v1274_v54 }
 0x17a   : > { %v2067_v46 = vadd.f32 %v2066_v26, %v2004_v38  ;;  %v2136_v32 = vadd.f32 %v2135_v59, %v2105_v5  ;;  %2039 = vst [vmem:[%s5775_s11 + $0xb0] sm:$0xff] %v2007_v63  ;;  %v2005_v52 = vadd.f32 %v1904_v30, %v1759_v20  ;;  %v4504_v16 = vpop.f32.mrf.mxu1  ;;  %4707 = vmatmul.mubr.msk.bf16.gmra.mxu1 %vm618_vm1, %v6440_v1  ;;  %v6449_v38 = vld [vmem:[#allocation30_spill] sm:$0xff]  ;;  %v6454_v1 = vld [vmem:[#allocation13_spill] sm:$0xff] }
 0x17b   : > { %v1764_v51 = vadd.f32 %v4470_v31, %v1518_v56  ;;  %v1671_v7 = vpop.f32.mrf.mxu0  ;;  %4676 = vmatprep.mubr.msk.bf16.mxu0 %vm618_vm1, %v6445_v48  ;;  %4710 = vmatprep.mubr.msk.bf16.mxu1 %vm618_vm1, %v5457_v12  ;;  %v6447_v12 = vld [vmem:[#allocation54_spill] sm:$0xff]  ;;  %v1522_v5 = vadd.f32 %v6448_v57, %v1276_v44  ;;  %v1277_v53 = vadd.f32 %v5663_v60, %v6449_v38  ;;  %v6450_v56 = vld [vmem:[#allocation31_spill] sm:$0xff]  ;;  %v6451_v31 = vld [vmem:[#allocation12_spill] sm:$0xff] }
 0x17c   : > { %v2137_v17 = vadd.f32 %v2136_v32, %v2106_v27  ;;  %2037 = vst [vmem:[%s5775_s11 + $0x90] sm:$0xff] %v2005_v52  ;;  %v2068_v15 = vadd.f32 %v2067_v46, %v2005_v52  ;;  %v2107_v14 = vmul.f32 %v2005_v52, %v2005_v52  ;;  %v1762_v28 = vadd.f32 %v1671_v7, %v1516_v29  ;;  %v1917_v37 = vpop.f32.mrf.mxu1  ;;  %v6453_v52 = vld [vmem:[#allocation57_spill] sm:$0xff] }
 0x17d   : > { %v2010_v36 = vadd.f32 %v4504_v16, %v1764_v51  ;;  %v4471_v9 = vpop.f32.mrf.mxu0  ;;  %v1517_v47 = vadd.f32 %v6447_v12, %v1271_v25  ;;  %v2109_v61 = vmul.f32 %v2007_v63, %v2007_v63  ;;  %v1275_v29 = vadd.f32 %v5667_v11, %v6450_v56  ;;  %v6457_v25 = vld [vmem:[#allocation59_spill] sm:$0xff]  ;;  %v6458_v48 = vld [vmem:[#allocation33_spill] sm:$0xff] }
 0x17e   : > { %v2069_v49 = vadd.f32 %v2068_v15, %v2006_v40  ;;  %v2138_v58 = vadd.f32 %v2137_v17, %v2107_v14  ;;  %v2008_v45 = vadd.f32 %v1917_v37, %v1762_v28  ;;  %v1765_v33 = vadd.f32 %v4471_v9, %v1519_v22  ;;  %v4505_v41 = vpop.f32.mrf.mxu1  ;;  %v6459_v37 = vld [vmem:[#allocation58_spill] sm:$0xff] }
 0x17f   : > { %2042 = vst [vmem:[%s5775_s11 + $0xe0] sm:$0xff] %v2010_v36  ;;  %v1674_v59 = vpop.f32.mrf.mxu0  ;;  %v1523_v62 = vadd.f32 %v6453_v52, %v1277_v53  ;;  %v1280_v21 = vadd.f32 %v6457_v25, %v6456_v2  ;;  %v1278_v17 = vadd.f32 %v5681_v35, %v6458_v48  ;;  %v1521_v50 = vadd.f32 %v6459_v37, %v1275_v29  ;;  %v6461_v35 = vld [vmem:[#allocation60_spill] sm:$0xff]  ;;  %v6462_v53 = vld [vmem:[#allocation61_spill] sm:$0xff]  ;;  %v6469_v52 = vld [vmem:[#allocation35_spill] sm:$0xff] }
 0x180   : > { %v2139_v26 = vadd.f32 %v2138_v58, %v2108_v18  ;;  %2040 = vst [vmem:[%s5775_s11 + $0xc0] sm:$0xff] %v2008_v45  ;;  %v2070_v20 = vadd.f32 %v2069_v49, %v2007_v63  ;;  %v2011_v30 = vadd.f32 %v4505_v41, %v1765_v33  ;;  %v1920_v40 = vpop.f32.mrf.mxu1  ;;  %v1763_v6 = vadd.f32 %v1674_v59, %v1517_v47  ;;  %v6452_v63 = vld [vmem:[#allocation28_spill] sm:$0xff] }
 0x181   : > { %v4474_v22 = vpop.f32.mrf.mxu0  ;;  %4677 = vmatmul.mubr.msk.bf16.gmra.mxu0 %vm618_vm1, %v6451_v31  ;;  %v2110_v13 = vmul.f32 %v2008_v45, %v2008_v45  ;;  %v6460_v49 = vld [vmem:[#allocation36_spill] sm:$0xff]  ;;  %v1526_v47 = vadd.f32 %v6461_v35, %v1280_v21  ;;  %v1524_v59 = vadd.f32 %v6462_v53, %v1278_v17  ;;  %v6466_v31 = vld [vmem:[#allocation34_spill] sm:$0xff]  ;;  %v6472_v21 = vld [vmem:[#allocation39_spill] sm:$0xff] }
 0x182   : > { %v2071_v60 = vadd.f32 %v2070_v20, %v2008_v45  ;;  %v2140_v46 = vadd.f32 %v2139_v26, %v2109_v61  ;;  %2043 = vst [vmem:[%s5775_s11 + $0xf0] sm:$0xff] %v2011_v30  ;;  %v1768_v27 = vadd.f32 %v4474_v22, %v1522_v5  ;;  %v4508_v32 = vpop.f32.mrf.mxu1  ;;  %4711 = vmatmul.mubr.msk.bf16.gmra.mxu1 %vm618_vm1, %v6452_v63  ;;  %v6473_v17 = vld [vmem:[#allocation64_spill] sm:$0xff] }
 0x183   : > { %v2009_v16 = vadd.f32 %v1920_v40, %v1763_v6  ;;  %v1687_v11 = vpop.f32.mrf.mxu0  ;;  %4680 = vmatprep.mubr.msk.bf16.mxu0 %vm618_vm1, %v6454_v1  ;;  %4714 = vmatprep.mubr.msk.bf16.mxu1 %vm618_vm1, %v6455_v0  ;;  %v1281_v58 = vadd.f32 %v5687_v42, %v6460_v49  ;;  %v2112_v45 = vmul.f32 %v2010_v36, %v2010_v36  ;;  %v6464_v42 = vld [vmem:[#allocation37_spill] sm:$0xff] }
 0x184   : > { %v2141_v19 = vadd.f32 %v2140_v46, %v2110_v13  ;;  %v2014_v44 = vadd.f32 %v4508_v32, %v1768_v27  ;;  %v1766_v51 = vadd.f32 %v1687_v11, %v1520_v55  ;;  %v1933_v7 = vpop.f32.mrf.mxu1  ;;  %v2113_v61 = vmul.f32 %v2011_v30, %v2011_v30  ;;  %v6463_v55 = vld [vmem:[#allocation14_spill] sm:$0xff] }
 0x185   : > { %2041 = vst [vmem:[%s5775_s11 + $0xd0] sm:$0xff] %v2009_v16  ;;  %v2072_v15 = vadd.f32 %v2071_v60, %v2009_v16  ;;  %v2111_v14 = vmul.f32 %v2009_v16, %v2009_v16  ;;  %v4475_v28 = vpop.f32.mrf.mxu0  ;;  %v6467_v60 = vld [vmem:[#allocation15_spill] sm:$0xff]  ;;  %v6468_v13 = vld [vmem:[#allocation62_spill] sm:$0xff]  ;;  %v6471_v16 = vld [vmem:[#allocation65_spill] sm:$0xff] }
 0x186   : > { %2046 = vst [vmem:[%s5775_s11 + $0x120] sm:$0xff] %v2014_v44  ;;  %v2012_v54 = vadd.f32 %v1933_v7, %v1766_v51  ;;  %v1769_v18 = vadd.f32 %v4475_v28, %v1523_v62  ;;  %v4509_v9 = vpop.f32.mrf.mxu1  ;;  %v6470_v62 = vld [vmem:[#allocation38_spill] sm:$0xff] }
 0x187   : > { %v2073_v33 = vadd.f32 %v2072_v15, %v2010_v36  ;;  %v2142_v41 = vadd.f32 %v2141_v19, %v2111_v14  ;;  %v1690_v12 = vpop.f32.mrf.mxu0  ;;  %v6465_v36 = vld [vmem:[#allocation63_spill] sm:$0xff]  ;;  %v1284_v11 = vadd.f32 %v6471_v16, %v6470_v62  ;;  %v1282_v19 = vadd.f32 %v5705_v39, %v6472_v21  ;;  %v6483_v16 = vld [vmem:[#allocation44_spill] sm:$0xff] }
 0x188   : > { %2044 = vst [vmem:[%s5775_s11 + $0x100] sm:$0xff] %v2012_v54  ;;  %v2015_v57 = vadd.f32 %v4509_v9, %v1769_v18  ;;  %v1767_v5 = vadd.f32 %v1690_v12, %v1521_v50  ;;  %v1936_v38 = vpop.f32.mrf.mxu1  ;;  %v1279_v56 = vadd.f32 %v6465_v36, %v6464_v42  ;;  %v2114_v27 = vmul.f32 %v2012_v54, %v2012_v54  ;;  %v6474_v50 = vld [vmem:[#allocation41_spill] sm:$0xff] }
 0x189   : > { %v2143_v26 = vadd.f32 %v2142_v41, %v2112_v45  ;;  %v2074_v20 = vadd.f32 %v2073_v33, %v2011_v30  ;;  %v4478_v40 = vpop.f32.mrf.mxu0  ;;  %4681 = vmatmul.mubr.msk.bf16.gmra.mxu0 %vm618_vm1, %v6463_v55  ;;  %v1527_v30 = vadd.f32 %v6468_v13, %v1281_v58  ;;  %v2116_v18 = vmul.f32 %v2014_v44, %v2014_v44  ;;  %v6475_v45 = vld [vmem:[#allocation66_spill] sm:$0xff]  ;;  %v6479_v55 = vld [vmem:[#allocation67_spill] sm:$0xff] }
 0x18a   : > { %2047 = vst [vmem:[%s5775_s11 + $0x130] sm:$0xff] %v2015_v57  ;;  %v2013_v29 = vadd.f32 %v1936_v38, %v1767_v5  ;;  %v1772_v6 = vadd.f32 %v4478_v40, %v1526_v47  ;;  %v4512_v22 = vpop.f32.mrf.mxu1  ;;  %4715 = vmatmul.mubr.msk.bf16.gmra.mxu1 %vm618_vm1, %v6466_v31  ;;  %4684 = vmatprep.mubr.msk.bf16.mxu0 %vm618_vm1, %v6467_v60  ;;  %v6478_v40 = vld [vmem:[#allocation40_spill] sm:$0xff] }
 0x18b   : > { %v2075_v46 = vadd.f32 %v2074_v20, %v2012_v54  ;;  %v2144_v32 = vadd.f32 %v2143_v26, %v2113_v61  ;;  %v1703_v63 = vpop.f32.mrf.mxu0  ;;  %4718 = vmatprep.mubr.msk.bf16.mxu1 %vm618_vm1, %v6469_v52  ;;  %v1525_v15 = vadd.f32 %v6473_v17, %v1279_v56  ;;  %v1285_v54 = vadd.f32 %v5713_v4, %v6474_v50  ;;  %v6476_v4 = vld [vmem:[#allocation16_spill] sm:$0xff] }
 0x18c   : > { %2045 = vst [vmem:[%s5775_s11 + $0x110] sm:$0xff] %v2013_v29  ;;  %v2115_v1 = vmul.f32 %v2013_v29, %v2013_v29  ;;  %v2018_v0 = vadd.f32 %v4512_v22, %v1772_v6  ;;  %v1770_v2 = vadd.f32 %v1703_v63, %v1524_v59  ;;  %v1949_v25 = vpop.f32.mrf.mxu1  ;;  %v1530_v33 = vadd.f32 %v6475_v45, %v1284_v11  ;;  %v6480_v6 = vld [vmem:[#allocation43_spill] sm:$0xff]  ;;  %v6481_v22 = vld [vmem:[#allocation69_spill] sm:$0xff]  ;;  %v6482_v52 = vld [vmem:[#allocation68_spill] sm:$0xff] }
 0x18d   : > { %v2145_v51 = vadd.f32 %v2144_v32, %v2114_v27  ;;  %v2076_v7 = vadd.f32 %v2075_v46, %v2013_v29  ;;  %v4479_v48 = vpop.f32.mrf.mxu0  ;;  %v1528_v35 = vadd.f32 %v5711_v23, %v1282_v19  ;;  %v2117_v47 = vmul.f32 %v2015_v57, %v2015_v57  ;;  %v3901_v23 = vld [vmem:[%s4972_s9 + $0x19a] sm:$0xff] }
 0x18e   : > { %2050 = vst [vmem:[%s5775_s11 + $0x160] sm:$0xff] %v2018_v0  ;;  %v2016_v14 = vadd.f32 %v1949_v25, %v1770_v2  ;;  %v1773_v28 = vadd.f32 %v4479_v48, %v1527_v30  ;;  %v4513_v37 = vpop.f32.mrf.mxu1  ;;  %v1531_v42 = vadd.f32 %v6479_v55, %v1285_v54  ;;  %v1288_v31 = vadd.f32 %v6481_v22, %v6480_v6  ;;  %v6484_v11 = vld [vmem:[#allocation71_spill] sm:$0xff]  ;;  %v6485_v48 = vld [vmem:[#allocation70_spill] sm:$0xff] }
 0x18f   : > { %v2077_v9 = vadd.f32 %v2076_v7, %v2014_v44  ;;  %v2146_v49 = vadd.f32 %v2145_v51, %v2115_v1  ;;  %v1706_v58 = vpop.f32.mrf.mxu0  ;;  %v6477_v44 = vld [vmem:[#allocation42_spill] sm:$0xff]  ;;  %v1286_v1 = vadd.f32 %v6484_v11, %v6483_v16  ;;  %v2120_v21 = vmul.f32 %v2018_v0, %v2018_v0 }
 0x190   : > { %2048 = vst [vmem:[%s5775_s11 + $0x140] sm:$0xff] %v2016_v14  ;;  %v2019_v39 = vadd.f32 %v4513_v37, %v1773_v28  ;;  %v1771_v41 = vadd.f32 %v1706_v58, %v1525_v15  ;;  %v1952_v12 = vpop.f32.mrf.mxu1  ;;  %v1283_v59 = vadd.f32 %v5719_v10, %v6477_v44  ;;  %v2118_v56 = vmul.f32 %v2016_v14, %v2016_v14  ;;  %v6486_v15 = vld [vmem:[#allocation45_spill] sm:$0xff] }
 0x191   : > { %v2147_v5 = vadd.f32 %v2146_v49, %v2116_v18  ;;  %v2078_v38 = vadd.f32 %v2077_v9, %v2015_v57  ;;  %v4482_v53 = vpop.f32.mrf.mxu0  ;;  %4685 = vmatmul.mubr.msk.bf16.gmra.mxu0 %vm618_vm1, %v6476_v4  ;;  %v3902_v57 = vld [vmem:[%s4972_s9 + $0x1a2] sm:$0xff]  ;;  %v1534_v17 = vadd.f32 %v6485_v48, %v1288_v31  ;;  %v6487_v58 = vld [vmem:[#allocation17_spill] sm:$0xff]  ;;  %s4113_s9 = sshll.u32 %s4922_s16, 13 }
 0x192   : > { %2051 = vst [vmem:[%s5775_s11 + $0x170] sm:$0xff] %v2019_v39  ;;  %v2017_v61 = vadd.f32 %v1952_v12, %v1771_v41  ;;  %v1776_v26 = vadd.f32 %v4482_v53, %v1530_v33  ;;  %v4516_v20 = vpop.f32.mrf.mxu1  ;;  %4719 = vmatmul.mubr.msk.bf16.gmra.mxu1 %vm618_vm1, %v6478_v40  ;;  %4688 = vmatprep.mubr.msk.bf16.mxu0 %vm618_vm1, %v5255_v3  ;;  %v6489_v33 = vld [vmem:[#allocation46_spill] sm:$0xff]  ;;  %v6490_v53 = vld [vmem:[#allocation73_spill] sm:$0xff]  ;;  %s6264_s24 = scalar_lea.hbm %s6336_s2, %s4113_s9 }
 0x193   : > { %v2079_v36 = vadd.f32 %v2078_v38, %v2016_v14  ;;  %v2148_v29 = vadd.f32 %v2147_v5, %v2117_v47  ;;  %v1719_v10 = vpop.f32.mrf.mxu0  ;;  %4722 = vmatprep.mubr.msk.bf16.mxu1 %vm618_vm1, %v5717_v43  ;;  %v614_v63 = vpack.c.bf16 %v3902_v57, %v3901_v23  ;;  %v1529_v62 = vadd.f32 %v6482_v52, %v1283_v59 }
 0x194   : > { %2049 = vst [vmem:[%s5775_s11 + $0x150] sm:$0xff] %v2017_v61  ;;  %v2119_v60 = vmul.f32 %v2017_v61, %v2017_v61  ;;  %v2022_v13 = vadd.f32 %v4516_v20, %v1776_v26  ;;  %v1774_v30 = vadd.f32 %v1719_v10, %v1528_v35  ;;  %v1965_v3 = vpop.f32.mrf.mxu1  ;;  %v1289_v14 = vadd.f32 %v5741_v8, %v6486_v15 }
 0x195   : > { %v2149_v46 = vadd.f32 %v2148_v29, %v2118_v56  ;;  %v2080_v27 = vadd.f32 %v2079_v36, %v2017_v61  ;;  %v4483_v32 = vpop.f32.mrf.mxu0  ;;  %v2121_v54 = vmul.f32 %v2019_v39, %v2019_v39  ;;  %v1287_v41 = vadd.f32 %v5750_v24, %v6489_v33 }
 0x196   : > { %2054 = vst [vmem:[%s5775_s11 + $0x1a0] sm:$0xff] %v2022_v13  ;;  %v2020_v43 = vadd.f32 %v1965_v3, %v1774_v30  ;;  %v1777_v2 = vadd.f32 %v4483_v32, %v1531_v42  ;;  %v4517_v25 = vpop.f32.mrf.mxu1  ;;  %v1535_v4 = vadd.f32 %v6490_v53, %v1289_v14  ;;  %v2124_v36 = vmul.f32 %v2022_v13, %v2022_v13 }
 0x197   : > { %v2081_v19 = vadd.f32 %v2080_v27, %v2018_v0  ;;  %v2150_v51 = vadd.f32 %v2149_v46, %v2119_v60  ;;  %v1722_v7 = vpop.f32.mrf.mxu0  ;;  %v6488_v0 = vld [vmem:[#allocation72_spill] sm:$0xff]  ;;  %v1533_v23 = vadd.f32 %v5755_v34, %v1287_v41 }
 0x198   : > { %2052 = vst [vmem:[%s5775_s11 + $0x180] sm:$0xff] %v2020_v43  ;;  %v2023_v28 = vadd.f32 %v4517_v25, %v1777_v2  ;;  %v1775_v37 = vadd.f32 %v1722_v7, %v1529_v62  ;;  %v1968_v50 = vpop.f32.mrf.mxu1  ;;  %v1532_v45 = vadd.f32 %v6488_v0, %v1286_v1  ;;  %v2122_v5 = vmul.f32 %v2020_v43, %v2020_v43 }
 0x199   : > { %v2151_v18 = vadd.f32 %v2150_v51, %v2120_v21  ;;  %v2082_v9 = vadd.f32 %v2081_v19, %v2019_v39  ;;  %v4486_v49 = vpop.f32.mrf.mxu0  ;;  %4689 = vmatmul.mubr.msk.bf16.gmra.mxu0 %vm618_vm1, %v6487_v58 }
 0x19a   : > { %2055 = vst [vmem:[%s5775_s11 + $0x1b0] sm:$0xff] %v2023_v28  ;;  %v2021_v12 = vadd.f32 %v1968_v50, %v1775_v37  ;;  %v1780_v8 = vadd.f32 %v4486_v49, %v1534_v17  ;;  %v4520_v35 = vpop.f32.mrf.mxu1  ;;  %4723 = vmatmul.mubr.msk.bf16.gmra.mxu1 %vm618_vm1, %v614_v63  ;;  %v2125_v60 = vmul.f32 %v2023_v28, %v2023_v28 }
 0x19b   : > { %v2083_v47 = vadd.f32 %v2082_v9, %v2020_v43  ;;  %v2152_v38 = vadd.f32 %v2151_v18, %v2121_v54  ;;  %v1735_v39 = vpop.f32.mrf.mxu0 }
 0x19c   : > { %2053 = vst [vmem:[%s5775_s11 + $0x190] sm:$0xff] %v2021_v12  ;;  %v2123_v44 = vmul.f32 %v2021_v12, %v2021_v12  ;;  %v2026_v59 = vadd.f32 %v4520_v35, %v1780_v8  ;;  %v1778_v61 = vadd.f32 %v1735_v39, %v1532_v45  ;;  %v1981_v26 = vpop.f32.mrf.mxu1 }
 0x19d   : > { %v2153_v24 = vadd.f32 %v2152_v38, %v2122_v5  ;;  %v2084_v20 = vadd.f32 %v2083_v47, %v2021_v12  ;;  %v4487_v40 = vpop.f32.mrf.mxu0 }
 0x19e   : > { %2058 = vst [vmem:[%s5775_s11 + $0x1e0] sm:$0xff] %v2026_v59  ;;  %v2024_v57 = vadd.f32 %v1981_v26, %v1778_v61  ;;  %v1781_v55 = vadd.f32 %v4487_v40, %v1535_v4  ;;  %v4521_v42 = vpop.f32.mrf.mxu1  ;;  %v2128_v19 = vmul.f32 %v2026_v59, %v2026_v59 }
 0x19f   : > { %v2085_v56 = vadd.f32 %v2084_v20, %v2022_v13  ;;  %v2154_v29 = vadd.f32 %v2153_v24, %v2123_v44  ;;  %v1738_v10 = vpop.f32.mrf.mxu0 }
 0x1a0   : > { %2056 = vst [vmem:[%s5775_s11 + $0x1c0] sm:$0xff] %v2024_v57  ;;  %v2027_v6 = vadd.f32 %v4521_v42, %v1781_v55  ;;  %v1779_v22 = vadd.f32 %v1738_v10, %v1533_v23  ;;  %v1984_v31 = vpop.f32.mrf.mxu1  ;;  %v2126_v63 = vmul.f32 %v2024_v57, %v2024_v57 }
 0x1a1   : > { %v2155_v30 = vadd.f32 %v2154_v29, %v2124_v36  ;;  %v2086_v3 = vadd.f32 %v2085_v56, %v2023_v28  ;;  %v4526_v46 = vpop.f32.mrf.mxu0 }
 0x1a2   : > { %2059 = vst [vmem:[%s5775_s11 + $0x1f0] sm:$0xff] %v2027_v6  ;;  %v2025_v34 = vadd.f32 %v1984_v31, %v1779_v22  ;;  %v4560_v27 = vpop.f32.mrf.mxu1  ;;  %v2129_v14 = vmul.f32 %v2027_v6, %v2027_v6 }
 0x1a3   : > { %v2087_v32 = vadd.f32 %v2086_v3, %v2024_v57  ;;  %v2156_v52 = vadd.f32 %v2155_v30, %v2125_v60  ;;  %v5941_v62 = vadd.f32 %v4560_v27, %v4526_v46  ;;  %v2257_v13 = vpop.f32.mrf.mxu0 }
 0x1a4   : > { %2057 = vst [vmem:[%s5775_s11 + $0x1d0] sm:$0xff] %v2025_v34  ;;  %v2127_v16 = vmul.f32 %v2025_v34, %v2025_v34  ;;  %v2421_v11 = vpop.f32.mrf.mxu1 }
 0x1a5   : > { %v2157_v1 = vadd.f32 %v2156_v52, %v2126_v63  ;;  %v2088_v43 = vadd.f32 %v2087_v32, %v2025_v34  ;;  %v5944_v2 = vadd.f32 %v2421_v11, %v2257_v13  ;;  %v4527_v25 = vpop.f32.mrf.mxu0 }
 0x1a6   : > { %v4561_v21 = vpop.f32.mrf.mxu1 }
 0x1a7   : > { %v2089_v51 = vadd.f32 %v2088_v43, %v2026_v59  ;;  %v2158_v7 = vadd.f32 %v2157_v1, %v2127_v16  ;;  %v5946_v48 = vadd.f32 %v4561_v21, %v4527_v25  ;;  %v2260_v17 = vpop.f32.mrf.mxu0 }
 0x1a8   : > { %v2424_v15 = vpop.f32.mrf.mxu1 }
 0x1a9   : > { %v5948_v28 = vadd.f32 %v2089_v51, %v2027_v6  ;;  %v2159_v37 = vadd.f32 %v2158_v7, %v2128_v19  ;;  %v5950_v50 = vadd.f32 %v2424_v15, %v2260_v17  ;;  %v4530_v54 = vpop.f32.mrf.mxu0 }
 0x1aa   : > { %v4564_v18 = vpop.f32.mrf.mxu1 }
 0x1ab   : > { %6491 = vst [vmem:[#allocation19_spill] sm:$0xff] %v5948_v28  ;;  %v5952_v9 = vadd.f32 %v2159_v37, %v2129_v14  ;;  %v5954_v49 = vadd.f32 %v4564_v18, %v4530_v54  ;;  %v2273_v58 = vpop.f32.mrf.mxu0 }
 0x1ac   : > { %v2437_v0 = vpop.f32.mrf.mxu1 }
 0x1ad   : > { %6492 = vst [vmem:[#allocation20_spill] sm:$0xff] %v5952_v9  ;;  %v5956_v45 = vadd.f32 %v2437_v0, %v2273_v58  ;;  %v4531_v33 = vpop.f32.mrf.mxu0 }
 0x1ae   : > { %v4565_v41 = vpop.f32.mrf.mxu1 }
 0x1af   : > { %v5958_v12 = vadd.f32 %v4565_v41, %v4531_v33  ;;  %v2276_v8 = vpop.f32.mrf.mxu0 }
 0x1b0   : > { %v2440_v35 = vpop.f32.mrf.mxu1 }
 0x1b1   : > { %v5960_v47 = vadd.f32 %v2440_v35, %v2276_v8  ;;  %v4534_v5 = vpop.f32.mrf.mxu0 }
 0x1b2   : > { %v4568_v38 = vpop.f32.mrf.mxu1 }
 0x1b3   : > { %v5962_v39 = vadd.f32 %v4568_v38, %v4534_v5  ;;  %v2289_v53 = vpop.f32.mrf.mxu0 }
 0x1b4   : > { %v2453_v4 = vpop.f32.mrf.mxu1 }
 0x1b5   : > { %v5964_v44 = vadd.f32 %v2453_v4, %v2289_v53  ;;  %v4535_v59 = vpop.f32.mrf.mxu0 }
 0x1b6   : > { %v4569_v61 = vpop.f32.mrf.mxu1 }
 0x1b7   : > { %v5966_v26 = vadd.f32 %v4569_v61, %v4535_v59  ;;  %v2292_v24 = vpop.f32.mrf.mxu0 }
 0x1b8   : > { %v2456_v20 = vpop.f32.mrf.mxu1 }
 0x1b9   : > { %v5968_v40 = vadd.f32 %v2456_v20, %v2292_v24  ;;  %v4538_v23 = vpop.f32.mrf.mxu0 }
 0x1ba   : > { %v4572_v57 = vpop.f32.mrf.mxu1 }
 0x1bb   : > { %v5970_v55 = vadd.f32 %v4572_v57, %v4538_v23  ;;  %v2305_v42 = vpop.f32.mrf.mxu0 }
 0x1bc   : > { %v2469_v36 = vpop.f32.mrf.mxu1 }
 0x1bd   : > { %v5972_v56 = vadd.f32 %v2469_v36, %v2305_v42  ;;  %v4539_v29 = vpop.f32.mrf.mxu0 }
 0x1be   : > { %v4573_v10 = vpop.f32.mrf.mxu1 }
 0x1bf   : > { %v5974_v6 = vadd.f32 %v4573_v10, %v4539_v29  ;;  %v2308_v22 = vpop.f32.mrf.mxu0 }
 0x1c0   : > { %v2472_v31 = vpop.f32.mrf.mxu1 }
 0x1c1   : > { %v5976_v60 = vadd.f32 %v2472_v31, %v2308_v22  ;;  %v4542_v30 = vpop.f32.mrf.mxu0 }
 0x1c2   : > { %v4576_v3 = vpop.f32.mrf.mxu1 }
 0x1c3   : > { %v5978_v46 = vadd.f32 %v4576_v3, %v4542_v30  ;;  %v2321_v34 = vpop.f32.mrf.mxu0 }
 0x1c4   : > { %v2485_v27 = vpop.f32.mrf.mxu1 }
 0x1c5   : > { %v5980_v32 = vadd.f32 %v2485_v27, %v2321_v34  ;;  %v4543_v63 = vpop.f32.mrf.mxu0 }
 0x1c6   : > { %v4577_v52 = vpop.f32.mrf.mxu1 }
 0x1c7   : > { %v5982_v13 = vadd.f32 %v4577_v52, %v4543_v63  ;;  %v2324_v16 = vpop.f32.mrf.mxu0 }
 0x1c8   : > { %v2488_v11 = vpop.f32.mrf.mxu1 }
 0x1c9   : > { %6493 = vst [vmem:[#allocation8_spill] sm:$0xff] %v5982_v13  ;;  %v5984_v1 = vadd.f32 %v2488_v11, %v2324_v16  ;;  %v4546_v43 = vpop.f32.mrf.mxu0 }
 0x1ca   : > { %v4580_v25 = vpop.f32.mrf.mxu1 }
 0x1cb   : > { %6494 = vst [vmem:[#allocation18_spill] sm:$0xff] %v5984_v1  ;;  %v5986_v21 = vadd.f32 %v4580_v25, %v4546_v43  ;;  %v2337_v19 = vpop.f32.mrf.mxu0 }
 0x1cc   : > { %v2501_v51 = vpop.f32.mrf.mxu1 }
 0x1cd   : > { %6495 = vst [vmem:[#allocation47_spill] sm:$0xff] %v5986_v21  ;;  %v5988_v7 = vadd.f32 %v2501_v51, %v2337_v19  ;;  %v4547_v17 = vpop.f32.mrf.mxu0 }
 0x1ce   : > { %v4581_v15 = vpop.f32.mrf.mxu1 }
 0x1cf   : > { %6496 = vst [vmem:[#allocation48_spill] sm:$0xff] %v5988_v7  ;;  %v5990_v14 = vadd.f32 %v4581_v15, %v4547_v17  ;;  %v2340_v37 = vpop.f32.mrf.mxu0 }
 0x1d0   : > { %v2504_v54 = vpop.f32.mrf.mxu1 }
 0x1d1   : > { %6497 = vst [vmem:[#allocation49_spill] sm:$0xff] %v5990_v14  ;;  %v5992_v18 = vadd.f32 %v2504_v54, %v2340_v37  ;;  %v4550_v58 = vpop.f32.mrf.mxu0 }
 0x1d2   : > { %v4584_v0 = vpop.f32.mrf.mxu1 }
 0x1d3   : > { %6498 = vst [vmem:[#allocation9_spill] sm:$0xff] %v5992_v18  ;;  %v5994_v33 = vadd.f32 %v4584_v0, %v4550_v58  ;;  %v2353_v41 = vpop.f32.mrf.mxu0 }
 0x1d4   : > { %v2517_v8 = vpop.f32.mrf.mxu1 }
 0x1d5   : > { %6499 = vst [vmem:[#allocation21_spill] sm:$0xff] %v5994_v33  ;;  %v5996_v35 = vadd.f32 %v2517_v8, %v2353_v41  ;;  %v4551_v5 = vpop.f32.mrf.mxu0 }
 0x1d6   : > { %v4585_v38 = vpop.f32.mrf.mxu1 }
 0x1d7   : > { %6500 = vst [vmem:[#allocation50_spill] sm:$0xff] %v5996_v35  ;;  %v5998_v53 = vadd.f32 %v4585_v38, %v4551_v5  ;;  %v2356_v4 = vpop.f32.mrf.mxu0 }
 0x1d8   : > { %v2520_v59 = vpop.f32.mrf.mxu1 }
 0x1d9   : > { %6501 = vst [vmem:[#allocation22_spill] sm:$0xff] %v5998_v53  ;;  %v6000_v61 = vadd.f32 %v2520_v59, %v2356_v4  ;;  %v4554_v24 = vpop.f32.mrf.mxu0 }
 0x1da   : > { %v4588_v20 = vpop.f32.mrf.mxu1 }
 0x1db   : > { %6502 = vst [vmem:[#allocation24_spill] sm:$0xff] %v6000_v61  ;;  %v6002_v23 = vadd.f32 %v4588_v20, %v4554_v24  ;;  %v2369_v57 = vpop.f32.mrf.mxu0 }
 0x1dc   : > { %v2533_v42 = vpop.f32.mrf.mxu1 }
 0x1dd   : > { %6503 = vst [vmem:[#allocation51_spill] sm:$0xff] %v6002_v23  ;;  %v6004_v36 = vadd.f32 %v2533_v42, %v2369_v57  ;;  %v4555_v29 = vpop.f32.mrf.mxu0 }
 0x1de   : > { %v4589_v10 = vpop.f32.mrf.mxu1 }
 0x1df   : > { %6504 = vst [vmem:[#allocation52_spill] sm:$0xff] %v6004_v36  ;;  %v6006_v22 = vadd.f32 %v4589_v10, %v4555_v29  ;;  %v2372_v31 = vpop.f32.mrf.mxu0 }
 0x1e0   : > { %v2536_v30 = vpop.f32.mrf.mxu1 }
 0x1e1   : > { %6505 = vst [vmem:[#allocation10_spill] sm:$0xff] %v6006_v22  ;;  %v6008_v3 = vadd.f32 %v2536_v30, %v2372_v31  ;;  %v4594_v34 = vpop.f32.mrf.mxu0 }
 0x1e2   : > { %v6010_v27 = vpop.f32.mrf.mxu1 }
 0x1e3   : > { %6506 = vst [vmem:[#allocation23_spill] sm:$0xff] %v6008_v3  ;;  %v2587_v63 = vpop.f32.mrf.mxu0 }
 0x1e4   : > { %v6012_v52 = vpop.f32.mrf.mxu1 }
 0x1e5   : > { %v4595_v16 = vpop.f32.mrf.mxu0 }
 0x1e6   : > { %v6014_v11 = vpop.f32.mrf.mxu1 }
 0x1e7   : > { %v6016_v43 = vpop.f32.mrf.mxu0 }
 0x1e8   : > { %v6018_v25 = vpop.f32.mrf.mxu1 }
 0x1e9   : > { %v6020_v19 = vpop.f32.mrf.mxu0 }
 0x1ea   : > { %v6022_v51 = vpop.f32.mrf.mxu1 }
 0x1eb   : > { %v6024_v17 = vpop.f32.mrf.mxu0 }
 0x1ec   : > { %v6026_v15 = vpop.f32.mrf.mxu1 }
 0x1ed   : > { %v6028_v37 = vpop.f32.mrf.mxu0 }
 0x1ee   : > { %v6030_v54 = vpop.f32.mrf.mxu1 }
 0x1ef   : > { %v6032_v58 = vpop.f32.mrf.mxu0 }
 0x1f0   : > { %v6034_v0 = vpop.f32.mrf.mxu1 }
 0x1f1   : > { %v6036_v41 = vpop.f32.mrf.mxu0 }
 0x1f2   : > { %v6038_v8 = vpop.f32.mrf.mxu1 }
 0x1f3   : > { %v6040_v5 = vpop.f32.mrf.mxu0 }
 0x1f4   : > { %v6042_v38 = vpop.f32.mrf.mxu1 }
 0x1f5   : > { %v6044_v4 = vpop.f32.mrf.mxu0 }
 0x1f6   : > { %v6046_v59 = vpop.f32.mrf.mxu1 }
 0x1f7   : > { %v6048_v24 = vpop.f32.mrf.mxu0 }
 0x1f8   : > { %v6050_v20 = vpop.f32.mrf.mxu1 }
 0x1f9   : > { %v6052_v57 = vpop.f32.mrf.mxu0 }
 0x1fa   : > { %v6054_v42 = vpop.f32.mrf.mxu1 }
 0x1fb   : > { %v6056_v29 = vpop.f32.mrf.mxu0 }
 0x1fc   : > { %v6058_v10 = vpop.f32.mrf.mxu1 }
 0x1fd   : > { %v6060_v31 = vpop.f32.mrf.mxu0 }
 0x1fe   : > { %v6062_v30 = vpop.f32.mrf.mxu1 }
 0x1ff   : > { %v6064_v9 = vpop.f32.mrf.mxu0 }
 0x200   : > { %v6066_v28 = vpop.f32.mrf.mxu1 }
 0x201   : > { %v6068_v3 = vpop.f32.mrf.mxu0 }
 0x202   : > { %v6070_v22 = vpop.f32.mrf.mxu1 }
 0x203   : > { %v6072_v36 = vpop.f32.mrf.mxu0 }
 0x204   : > { %v6074_v23 = vpop.f32.mrf.mxu1 }
 0x205   : > { %6507 = vst [vmem:[#allocation25_spill] sm:$0xff] %v6074_v23  ;;  %v6076_v61 = vpop.f32.mrf.mxu0 }
 0x206   : > { %6508 = vst [vmem:[#allocation53_spill] sm:$0xff] %v6076_v61  ;;  %v6078_v53 = vpop.f32.mrf.mxu1 }
 0x207   : > { %6509 = vst [vmem:[#allocation26_spill] sm:$0xff] %v6078_v53  ;;  %v6080_v35 = vpop.f32.mrf.mxu0 }
 0x208   : > { %6510 = vst [vmem:[#allocation55_spill] sm:$0xff] %v6080_v35  ;;  %v6082_v33 = vpop.f32.mrf.mxu1 }
 0x209   : > { %6511 = vst [vmem:[#allocation11_spill] sm:$0xff] %v6082_v33  ;;  %v6084_v18 = vpop.f32.mrf.mxu0 }
 0x20a   : > { %6512 = vst [vmem:[#allocation27_spill] sm:$0xff] %v6084_v18  ;;  %v6086_v14 = vpop.f32.mrf.mxu1 }
 0x20b   : > { %6513 = vst [vmem:[#allocation54_spill] sm:$0xff] %v6086_v14  ;;  %v6088_v7 = vpop.f32.mrf.mxu0 }
 0x20c   : > { %6514 = vst [vmem:[#allocation56_spill] sm:$0xff] %v6088_v7  ;;  %v6090_v21 = vpop.f32.mrf.mxu1 }
 0x20d   : > { %6515 = vst [vmem:[#allocation30_spill] sm:$0xff] %v6090_v21  ;;  %v6092_v1 = vpop.f32.mrf.mxu0 }
 0x20e   : > { %6516 = vst [vmem:[#allocation31_spill] sm:$0xff] %v6092_v1  ;;  %v6094_v13 = vpop.f32.mrf.mxu1 }
 0x20f   : > { %6517 = vst [vmem:[#allocation12_spill] sm:$0xff] %v6094_v13  ;;  %v6096_v23 = vpop.f32.mrf.mxu0 }
 0x210   : > { %6518 = vst [vmem:[#allocation28_spill] sm:$0xff] %v6096_v23  ;;  %v6098_v61 = vpop.f32.mrf.mxu1 }
 0x211   : > { %6519 = vst [vmem:[#allocation57_spill] sm:$0xff] %v6098_v61  ;;  %v6100_v53 = vpop.f32.mrf.mxu0 }
 0x212   : > { %6520 = vst [vmem:[#allocation13_spill] sm:$0xff] %v6100_v53  ;;  %v6102_v35 = vpop.f32.mrf.mxu1 }
 0x213   : > { %6521 = vst [vmem:[#allocation29_spill] sm:$0xff] %v6102_v35  ;;  %v6104_v33 = vpop.f32.mrf.mxu0  ;;  %v2716_v35 = vadd.f32 %v4594_v34, %v5941_v62  ;;  %v2715_v34 = vadd.f32 %v6016_v43, %v5950_v50  ;;  %v2719_v43 = vadd.f32 %v6032_v58, %v5960_v47 }
 0x214   : > { %6522 = vst [vmem:[#allocation32_spill] sm:$0xff] %v6104_v33  ;;  %v6106_v18 = vpop.f32.mrf.mxu1 }
 0x215   : > { %6523 = vst [vmem:[#allocation59_spill] sm:$0xff] %v6106_v18  ;;  %v6108_v14 = vpop.f32.mrf.mxu0  ;;  %v2714_v18 = vadd.f32 %v2587_v63, %v5944_v2 }
 0x216   : > { %6524 = vst [vmem:[#allocation33_spill] sm:$0xff] %v6108_v14  ;;  %v6110_v7 = vpop.f32.mrf.mxu1 }
 0x217   : > { %6525 = vst [vmem:[#allocation58_spill] sm:$0xff] %v6110_v7  ;;  %v6112_v21 = vpop.f32.mrf.mxu0  ;;  %v2960_v62 = vadd.f32 %v6012_v52, %v2714_v18  ;;  %v2718_v18 = vadd.f32 %v6024_v17, %v5956_v45 }
 0x218   : > { %v6114_v1 = vpop.f32.mrf.mxu1 }
 0x219   : > { %6526 = vst [vmem:[#allocation36_spill] sm:$0xff] %v6114_v1  ;;  %v6116_v13 = vpop.f32.mrf.mxu0  ;;  %v2962_v1 = vadd.f32 %v6010_v27, %v2716_v35  ;;  %v2720_v35 = vadd.f32 %v6020_v19, %v5954_v49  ;;  %v2964_v45 = vadd.f32 %v6026_v15, %v2718_v18  ;;  %v2965_v15 = vadd.f32 %v6034_v0, %v2719_v43 }
 0x21a   : > { %6527 = vst [vmem:[#allocation60_spill] sm:$0xff] %v6116_v13  ;;  %v6118_v23 = vpop.f32.mrf.mxu1  ;;  %v2717_v13 = vadd.f32 %v4595_v16, %v5946_v48 }
 0x21b   : > { %6528 = vst [vmem:[#allocation61_spill] sm:$0xff] %v6118_v23  ;;  %v6120_v61 = vpop.f32.mrf.mxu0 }
 0x21c   : > { %6529 = vst [vmem:[#allocation14_spill] sm:$0xff] %v6120_v61  ;;  %v6123_v53 = vpop.f32.mrf.mxu1  ;;  %v2963_v63 = vadd.f32 %v6014_v11, %v2717_v13  ;;  %v2966_v13 = vadd.f32 %v6022_v51, %v2720_v35  ;;  %v2721_v11 = vadd.f32 %v6028_v37, %v5958_v12  ;;  %v2724_v51 = vadd.f32 %v6036_v41, %v5962_v39 }
 0x21d   : > { %6530 = vst [vmem:[#allocation37_spill] sm:$0xff] %v6123_v53  ;;  %v6125_v33 = vpop.f32.mrf.mxu0 }
 0x21e   : > { %6531 = vst [vmem:[#allocation63_spill] sm:$0xff] %v6125_v33  ;;  %v6128_v14 = vpop.f32.mrf.mxu1  ;;  %v2967_v47 = vadd.f32 %v6030_v54, %v2721_v11  ;;  %v2970_v41 = vadd.f32 %v6038_v8, %v2724_v51 }
 0x21f   : > { %6532 = vst [vmem:[#allocation34_spill] sm:$0xff] %v6128_v14  ;;  %v6130_v7 = vpop.f32.mrf.mxu0 }
 0x220   : > { %v6134_v23 = vpop.f32.mrf.mxu1 }
 0x221   : > { %6533 = vst [vmem:[#allocation15_spill] sm:$0xff] %v6134_v23  ;;  %v4662_v61 = vpop.f32.mrf.mxu0  ;;  %v2961_v23 = vadd.f32 %v6018_v25, %v2715_v34 }
 0x222   : > { %v3160_v53 = vadd.f32 %v4662_v61, %v2962_v1  ;;  %v4696_v33 = vpop.f32.mrf.mxu1 }
 0x223   : > { %v3031_v2 = vpop.f32.mrf.mxu0 }
 0x224   : > { %v3406_v27 = vadd.f32 %v4696_v33, %v3160_v53  ;;  %v3158_v48 = vadd.f32 %v3031_v2, %v2960_v62  ;;  %v3277_v16 = vpop.f32.mrf.mxu1 }
 0x225   : > { %v4663_v14 = vpop.f32.mrf.mxu0 }
 0x226   : > { %3438 = vst [vmem:[%s5775_s11 + $0x28] sm:$0xff] %v3406_v27  ;;  %v3404_v50 = vadd.f32 %v3277_v16, %v3158_v48  ;;  %v3161_v1 = vadd.f32 %v4663_v14, %v2963_v63  ;;  %v4697_v61 = vpop.f32.mrf.mxu1  ;;  %v3508_v35 = vmul.f32 %v3406_v27, %v3406_v27 }
 0x227   : > { %v3034_v52 = vpop.f32.mrf.mxu0 }
 0x228   : > { %3436 = vst [vmem:[%s5775_s11 + $0x8] sm:$0xff] %v3404_v50  ;;  %v3407_v49 = vadd.f32 %v4697_v61, %v3161_v1  ;;  %v3159_v33 = vadd.f32 %v3034_v52, %v2961_v23  ;;  %v3280_v53 = vpop.f32.mrf.mxu1  ;;  %v3506_v62 = vmul.f32 %v3404_v50, %v3404_v50  ;;  %v2725_v1 = vadd.f32 %v6044_v4, %v5966_v26 }
 0x229   : > { %v4666_v25 = vpop.f32.mrf.mxu0 }
 0x22a   : > { %3439 = vst [vmem:[%s5775_s11 + $0x38] sm:$0xff] %v3407_v49  ;;  %v3405_v14 = vadd.f32 %v3280_v53, %v3159_v33  ;;  %v3164_v19 = vadd.f32 %v4666_v25, %v2966_v13  ;;  %v4700_v17 = vpop.f32.mrf.mxu1  ;;  %v3509_v52 = vmul.f32 %v3407_v49, %v3407_v49  ;;  %v2723_v53 = vadd.f32 %v6048_v24, %v5968_v40 }
 0x22b   : > { %v3047_v23 = vpop.f32.mrf.mxu0 }
 0x22c   : > { %3437 = vst [vmem:[%s5775_s11 + $0x18] sm:$0xff] %v3405_v14  ;;  %v3468_v34 = vadd.f32 %v3405_v14, %v3404_v50  ;;  %v3507_v2 = vmul.f32 %v3405_v14, %v3405_v14  ;;  %v3410_v12 = vadd.f32 %v4700_v17, %v3164_v19  ;;  %v3162_v37 = vadd.f32 %v3047_v23, %v2964_v45  ;;  %v3293_v63 = vpop.f32.mrf.mxu1 }
 0x22d   : > { %v4667_v58 = vpop.f32.mrf.mxu0  ;;  %v2722_v50 = vadd.f32 %v6040_v5, %v5964_v44  ;;  %v2971_v14 = vadd.f32 %v6046_v59, %v2725_v1  ;;  %v2728_v23 = vadd.f32 %v6052_v57, %v5970_v55 }
 0x22e   : > { %v3469_v48 = vadd.f32 %v3468_v34, %v3406_v27  ;;  %v3538_v16 = vadd.f32 %v3507_v2, %v3506_v62  ;;  %3442 = vst [vmem:[%s5775_s11 + $0x68] sm:$0xff] %v3410_v12  ;;  %v3408_v18 = vadd.f32 %v3293_v63, %v3162_v37  ;;  %v4701_v39 = vpop.f32.mrf.mxu1  ;;  %v3165_v61 = vadd.f32 %v4667_v58, %v2967_v47 }
 0x22f   : > { %v3050_v54 = vpop.f32.mrf.mxu0  ;;  %v2968_v45 = vadd.f32 %v6042_v38, %v2722_v50  ;;  %v2969_v62 = vadd.f32 %v6050_v20, %v2723_v53  ;;  %v2726_v34 = vadd.f32 %v6056_v29, %v5972_v56  ;;  %v3512_v59 = vmul.f32 %v3410_v12, %v3410_v12 }
 0x230   : > { %v3539_v13 = vadd.f32 %v3538_v16, %v3508_v35  ;;  %3440 = vst [vmem:[%s5775_s11 + $0x48] sm:$0xff] %v3408_v18  ;;  %v3470_v0 = vadd.f32 %v3469_v48, %v3407_v49  ;;  %v3163_v27 = vadd.f32 %v3050_v54, %v2965_v15  ;;  %v3296_v33 = vpop.f32.mrf.mxu1  ;;  %v3510_v8 = vmul.f32 %v3408_v18, %v3408_v18 }
 0x231   : > { %v3411_v11 = vadd.f32 %v4701_v39, %v3165_v61  ;;  %v4670_v43 = vpop.f32.mrf.mxu0  ;;  %v2729_v58 = vadd.f32 %v6060_v31, %v5974_v6  ;;  %v2727_v54 = vadd.f32 %v6064_v9, %v5976_v60 }
 0x232   : > { %v3471_v44 = vadd.f32 %v3470_v0, %v3408_v18  ;;  %v3540_v5 = vadd.f32 %v3539_v13, %v3509_v52  ;;  %v3409_v25 = vadd.f32 %v3296_v33, %v3163_v27  ;;  %v3168_v26 = vadd.f32 %v4670_v43, %v2970_v41  ;;  %v4704_v4 = vpop.f32.mrf.mxu1 }
 0x233   : > { %3443 = vst [vmem:[%s5775_s11 + $0x78] sm:$0xff] %v3411_v11  ;;  %v3063_v49 = vpop.f32.mrf.mxu0  ;;  %v3513_v20 = vmul.f32 %v3411_v11, %v3411_v11  ;;  %v2974_v18 = vadd.f32 %v6054_v42, %v2728_v23  ;;  %v2975_v61 = vadd.f32 %v6062_v30, %v2729_v58  ;;  %v2732_v52 = vadd.f32 %v6068_v3, %v5978_v46 }
 0x234   : > { %v3541_v19 = vadd.f32 %v3540_v5, %v3510_v8  ;;  %3441 = vst [vmem:[%s5775_s11 + $0x58] sm:$0xff] %v3409_v25  ;;  %v3472_v17 = vadd.f32 %v3471_v44, %v3409_v25  ;;  %v3511_v51 = vmul.f32 %v3409_v25, %v3409_v25  ;;  %v3414_v40 = vadd.f32 %v4704_v4, %v3168_v26  ;;  %v3309_v24 = vpop.f32.mrf.mxu1  ;;  %v6534_v26 = vld [vmem:[#allocation8_spill] sm:$0xff]  ;;  %v6535_v4 = vld [vmem:[#allocation53_spill] sm:$0xff] }
 0x235   : > { %v3166_v38 = vadd.f32 %v3063_v49, %v2968_v45  ;;  %v4671_v2 = vpop.f32.mrf.mxu0  ;;  %v2730_v8 = vadd.f32 %v6072_v36, %v5980_v32  ;;  %v2973_v5 = vadd.f32 %v6066_v28, %v2727_v54  ;;  %v2978_v25 = vadd.f32 %v6070_v22, %v2732_v52  ;;  %v6545_v52 = vld [vmem:[#allocation49_spill] sm:$0xff] }
 0x236   : > { %v3473_v37 = vadd.f32 %v3472_v17, %v3410_v12  ;;  %v3542_v63 = vadd.f32 %v3541_v19, %v3511_v51  ;;  %3446 = vst [vmem:[%s5775_s11 + $0xa8] sm:$0xff] %v3414_v40  ;;  %v3169_v47 = vadd.f32 %v4671_v2, %v2971_v14  ;;  %v4705_v15 = vpop.f32.mrf.mxu1  ;;  %v2972_v12 = vadd.f32 %v6058_v10, %v2726_v34  ;;  %v6536_v51 = vld [vmem:[#allocation25_spill] sm:$0xff] }
 0x237   : > { %v3412_v35 = vadd.f32 %v3309_v24, %v3166_v38  ;;  %v3066_v48 = vpop.f32.mrf.mxu0  ;;  %v3516_v30 = vmul.f32 %v3414_v40, %v3414_v40  ;;  %v2733_v45 = vadd.f32 %v6535_v4, %v6534_v26  ;;  %v6537_v24 = vld [vmem:[#allocation18_spill] sm:$0xff]  ;;  %v6549_v26 = vld [vmem:[#allocation9_spill] sm:$0xff]  ;;  %v6550_v4 = vld [vmem:[#allocation28_spill] sm:$0xff] }
 0x238   : > { %v3543_v55 = vadd.f32 %v3542_v63, %v3512_v59  ;;  %v3474_v57 = vadd.f32 %v3473_v37, %v3411_v11  ;;  %v3415_v16 = vadd.f32 %v4705_v15, %v3169_v47  ;;  %v3167_v56 = vadd.f32 %v3066_v48, %v2969_v62  ;;  %v3312_v29 = vpop.f32.mrf.mxu1  ;;  %v6538_v62 = vld [vmem:[#allocation55_spill] sm:$0xff]  ;;  %v6539_v63 = vld [vmem:[#allocation26_spill] sm:$0xff] }
 0x239   : > { %3444 = vst [vmem:[%s5775_s11 + $0x88] sm:$0xff] %v3412_v35  ;;  %v4674_v39 = vpop.f32.mrf.mxu0  ;;  %v3514_v50 = vmul.f32 %v3412_v35, %v3412_v35  ;;  %v2731_v23 = vadd.f32 %v6538_v62, %v6537_v24  ;;  %v2979_v47 = vadd.f32 %v6539_v63, %v2733_v45  ;;  %v2735_v45 = vadd.f32 %v6550_v4, %v6549_v26  ;;  %v6552_v62 = vld [vmem:[#allocation21_spill] sm:$0xff] }
 0x23a   : > { %v3475_v41 = vadd.f32 %v3474_v57, %v3412_v35  ;;  %v3544_v1 = vadd.f32 %v3543_v55, %v3513_v20  ;;  %3447 = vst [vmem:[%s5775_s11 + $0xb8] sm:$0xff] %v3415_v16  ;;  %v3413_v6 = vadd.f32 %v3312_v29, %v3167_v56  ;;  %v4708_v31 = vpop.f32.mrf.mxu1  ;;  %v3172_v42 = vadd.f32 %v4674_v39, %v2974_v18  ;;  %v6540_v20 = vld [vmem:[#allocation47_spill] sm:$0xff]  ;;  %v6554_v63 = vld [vmem:[#allocation57_spill] sm:$0xff] }
 0x23b   : > { %v3079_v13 = vpop.f32.mrf.mxu0  ;;  %v3517_v32 = vmul.f32 %v3415_v16, %v3415_v16  ;;  %v6541_v35 = vld [vmem:[#allocation27_spill] sm:$0xff] }
 0x23c   : > { %v3545_v0 = vadd.f32 %v3544_v1, %v3514_v50  ;;  %3445 = vst [vmem:[%s5775_s11 + $0x98] sm:$0xff] %v3413_v6  ;;  %v3476_v10 = vadd.f32 %v3475_v41, %v3413_v6  ;;  %v3515_v27 = vmul.f32 %v3413_v6, %v3413_v6  ;;  %v3170_v33 = vadd.f32 %v3079_v13, %v2972_v12  ;;  %v3325_v53 = vpop.f32.mrf.mxu1  ;;  %v6542_v39 = vld [vmem:[#allocation11_spill] sm:$0xff]  ;;  %v6543_v50 = vld [vmem:[#allocation48_spill] sm:$0xff] }
 0x23d   : > { %v3418_v11 = vadd.f32 %v4708_v31, %v3172_v42  ;;  %v4675_v43 = vpop.f32.mrf.mxu0  ;;  %v2736_v48 = vadd.f32 %v6541_v35, %v6540_v20  ;;  %v2977_v41 = vadd.f32 %v6542_v39, %v2731_v23  ;;  %v6544_v1 = vld [vmem:[#allocation56_spill] sm:$0xff]  ;;  %v6546_v42 = vld [vmem:[#allocation31_spill] sm:$0xff]  ;;  %v6553_v23 = vld [vmem:[#allocation13_spill] sm:$0xff] }
 0x23e   : > { %v3477_v9 = vadd.f32 %v3476_v10, %v3414_v40  ;;  %v3546_v60 = vadd.f32 %v3545_v0, %v3515_v27  ;;  %v3416_v44 = vadd.f32 %v3325_v53, %v3170_v33  ;;  %v3173_v46 = vadd.f32 %v4675_v43, %v2975_v61  ;;  %v4709_v3 = vpop.f32.mrf.mxu1  ;;  %v6547_v53 = vld [vmem:[#allocation54_spill] sm:$0xff] }
 0x23f   : > { %3450 = vst [vmem:[%s5775_s11 + $0xe8] sm:$0xff] %v3418_v11  ;;  %v3082_v14 = vpop.f32.mrf.mxu0  ;;  %v2976_v40 = vadd.f32 %v6536_v51, %v2730_v8  ;;  %v2734_v6 = vadd.f32 %v6544_v1, %v6543_v50  ;;  %v2737_v13 = vadd.f32 %v6546_v42, %v6545_v52  ;;  %v3520_v0 = vmul.f32 %v3418_v11, %v3418_v11  ;;  %v6559_v50 = vld [vmem:[#allocation29_spill] sm:$0xff] }
 0x240   : > { %v3547_v36 = vadd.f32 %v3546_v60, %v3516_v30  ;;  %3448 = vst [vmem:[%s5775_s11 + $0xc8] sm:$0xff] %v3416_v44  ;;  %v3478_v49 = vadd.f32 %v3477_v9, %v3415_v16  ;;  %v3419_v19 = vadd.f32 %v4709_v3, %v3173_v46  ;;  %v3328_v17 = vpop.f32.mrf.mxu1  ;;  %v3171_v28 = vadd.f32 %v3082_v14, %v2973_v5  ;;  %v6548_v5 = vld [vmem:[#allocation30_spill] sm:$0xff] }
 0x241   : > { %v4678_v22 = vpop.f32.mrf.mxu0  ;;  %v3518_v38 = vmul.f32 %v3416_v44, %v3416_v44  ;;  %v2982_v8 = vadd.f32 %v6547_v53, %v2736_v48 }
 0x242   : > { %v3479_v34 = vadd.f32 %v3478_v49, %v3416_v44  ;;  %v3548_v2 = vadd.f32 %v3547_v36, %v3517_v32  ;;  %3451 = vst [vmem:[%s5775_s11 + $0xf8] sm:$0xff] %v3419_v19  ;;  %v3176_v59 = vadd.f32 %v4678_v22, %v2978_v25  ;;  %v4712_v37 = vpop.f32.mrf.mxu1  ;;  %v3417_v15 = vadd.f32 %v3328_v17, %v3171_v28  ;;  %v6551_v36 = vld [vmem:[#allocation12_spill] sm:$0xff] }
 0x243   : > { %v3095_v58 = vpop.f32.mrf.mxu0  ;;  %v3521_v60 = vmul.f32 %v3419_v19, %v3419_v19  ;;  %v2980_v25 = vadd.f32 %v6548_v5, %v2734_v6  ;;  %v2983_v49 = vadd.f32 %v6551_v36, %v2737_v13  ;;  %v6563_v5 = vld [vmem:[#allocation51_spill] sm:$0xff]  ;;  %v6565_v36 = vld [vmem:[#allocation36_spill] sm:$0xff] }
 0x244   : > { %v3549_v55 = vadd.f32 %v3548_v2, %v3518_v38  ;;  %v3422_v57 = vadd.f32 %v4712_v37, %v3176_v59  ;;  %v3174_v16 = vadd.f32 %v3095_v58, %v2976_v40  ;;  %v3341_v56 = vpop.f32.mrf.mxu1  ;;  %3449 = vst [vmem:[%s5775_s11 + $0xd8] sm:$0xff] %v3417_v15  ;;  %v3480_v29 = vadd.f32 %v3479_v34, %v3417_v15  ;;  %v6556_v58 = vld [vmem:[#allocation32_spill] sm:$0xff] }
 0x245   : > { %v3519_v18 = vmul.f32 %v3417_v15, %v3417_v15  ;;  %v4679_v12 = vpop.f32.mrf.mxu0  ;;  %v6555_v15 = vld [vmem:[#allocation50_spill] sm:$0xff] }
 0x246   : > { %3454 = vst [vmem:[%s5775_s11 + $0x128] sm:$0xff] %v3422_v57  ;;  %v3420_v31 = vadd.f32 %v3341_v56, %v3174_v16  ;;  %v3177_v61 = vadd.f32 %v4679_v12, %v2979_v47  ;;  %v4713_v54 = vpop.f32.mrf.mxu1  ;;  %v3481_v10 = vadd.f32 %v3480_v29, %v3418_v11  ;;  %v2981_v47 = vadd.f32 %v6554_v63, %v2735_v45  ;;  %v6557_v16 = vld [vmem:[#allocation22_spill] sm:$0xff]  ;;  %v6558_v56 = vld [vmem:[#allocation33_spill] sm:$0xff]  ;;  %v6570_v63 = vld [vmem:[#allocation63_spill] sm:$0xff] }
 0x247   : > { %v3550_v27 = vadd.f32 %v3549_v55, %v3519_v18  ;;  %v3098_v33 = vpop.f32.mrf.mxu0  ;;  %v2738_v20 = vadd.f32 %v6556_v58, %v6555_v15  ;;  %v2741_v29 = vadd.f32 %v6558_v56, %v6557_v16  ;;  %v3524_v18 = vmul.f32 %v3422_v57, %v3422_v57  ;;  %v6571_v56 = vld [vmem:[#allocation37_spill] sm:$0xff] }
 0x248   : > { %3452 = vst [vmem:[%s5775_s11 + $0x108] sm:$0xff] %v3420_v31  ;;  %v3423_v30 = vadd.f32 %v4713_v54, %v3177_v61  ;;  %v3175_v43 = vadd.f32 %v3098_v33, %v2977_v41  ;;  %v3344_v9 = vpop.f32.mrf.mxu1  ;;  %v3482_v46 = vadd.f32 %v3481_v10, %v3419_v19  ;;  %v3522_v51 = vmul.f32 %v3420_v31, %v3420_v31 }
 0x249   : > { %v3551_v44 = vadd.f32 %v3550_v27, %v3520_v0  ;;  %v4682_v3 = vpop.f32.mrf.mxu0  ;;  %v2740_v19 = vadd.f32 %v6553_v23, %v6552_v62  ;;  %v6560_v0 = vld [vmem:[#allocation59_spill] sm:$0xff]  ;;  %v6561_v27 = vld [vmem:[#allocation24_spill] sm:$0xff] }
 0x24a   : > { %3455 = vst [vmem:[%s5775_s11 + $0x138] sm:$0xff] %v3423_v30  ;;  %v3421_v11 = vadd.f32 %v3344_v9, %v3175_v43  ;;  %v3180_v14 = vadd.f32 %v4682_v3, %v2982_v8  ;;  %v4716_v32 = vpop.f32.mrf.mxu1  ;;  %v3483_v17 = vadd.f32 %v3482_v46, %v3420_v31  ;;  %v3525_v54 = vmul.f32 %v3423_v30, %v3423_v30  ;;  %v6562_v43 = vld [vmem:[#allocation58_spill] sm:$0xff] }
 0x24b   : > { %v3552_v40 = vadd.f32 %v3551_v44, %v3521_v60  ;;  %v3111_v24 = vpop.f32.mrf.mxu0  ;;  %v2986_v1 = vadd.f32 %v6559_v50, %v2740_v19  ;;  %v2984_v10 = vadd.f32 %v6560_v0, %v2738_v20  ;;  %v2739_v33 = vadd.f32 %v6112_v21, %v6561_v27 }
 0x24c   : > { %3453 = vst [vmem:[%s5775_s11 + $0x118] sm:$0xff] %v3421_v11  ;;  %v3523_v28 = vmul.f32 %v3421_v11, %v3421_v11  ;;  %v3426_v22 = vadd.f32 %v4716_v32, %v3180_v14  ;;  %v3178_v34 = vadd.f32 %v3111_v24, %v2980_v25  ;;  %v3357_v38 = vpop.f32.mrf.mxu1  ;;  %v3484_v59 = vadd.f32 %v3483_v17, %v3421_v11  ;;  %v6564_v25 = vld [vmem:[#allocation60_spill] sm:$0xff] }
 0x24d   : > { %v3553_v2 = vadd.f32 %v3552_v40, %v3522_v51  ;;  %v4683_v37 = vpop.f32.mrf.mxu0  ;;  %v2987_v9 = vadd.f32 %v6562_v43, %v2741_v29  ;;  %v6566_v17 = vld [vmem:[#allocation52_spill] sm:$0xff]  ;;  %v6567_v51 = vld [vmem:[#allocation14_spill] sm:$0xff] }
 0x24e   : > { %3458 = vst [vmem:[%s5775_s11 + $0x168] sm:$0xff] %v3426_v22  ;;  %v3424_v35 = vadd.f32 %v3357_v38, %v3178_v34  ;;  %v3181_v48 = vadd.f32 %v4683_v37, %v2983_v49  ;;  %v4717_v55 = vpop.f32.mrf.mxu1  ;;  %v3485_v12 = vadd.f32 %v3484_v59, %v3422_v57  ;;  %v2985_v49 = vadd.f32 %v6565_v36, %v2739_v33  ;;  %v6569_v37 = vld [vmem:[#allocation10_spill] sm:$0xff]  ;;  %v6574_v33 = vld [vmem:[#allocation15_spill] sm:$0xff] }
 0x24f   : > { %v3554_v39 = vadd.f32 %v3553_v2, %v3523_v28  ;;  %v3114_v41 = vpop.f32.mrf.mxu0  ;;  %v2742_v40 = vadd.f32 %v6567_v51, %v6566_v17  ;;  %v3528_v19 = vmul.f32 %v3426_v22, %v3426_v22  ;;  %v6568_v2 = vld [vmem:[#allocation61_spill] sm:$0xff] }
 0x250   : > { %3456 = vst [vmem:[%s5775_s11 + $0x148] sm:$0xff] %v3424_v35  ;;  %v3427_v6 = vadd.f32 %v4717_v55, %v3181_v48  ;;  %v3179_v31 = vadd.f32 %v3114_v41, %v2981_v47  ;;  %v3360_v61 = vpop.f32.mrf.mxu1  ;;  %v3486_v42 = vadd.f32 %v3485_v12, %v3423_v30  ;;  %v3526_v44 = vmul.f32 %v3424_v35, %v3424_v35 }
 0x251   : > { %v3555_v52 = vadd.f32 %v3554_v39, %v3524_v18  ;;  %v4686_v13 = vpop.f32.mrf.mxu0  ;;  %v2744_v30 = vadd.f32 %v6564_v25, %v6563_v5  ;;  %v2745_v47 = vadd.f32 %v6570_v63, %v6569_v37  ;;  %v2988_v29 = vadd.f32 %v6571_v56, %v2742_v40  ;;  %v6572_v18 = vld [vmem:[#allocation23_spill] sm:$0xff] }
 0x252   : > { %3459 = vst [vmem:[%s5775_s11 + $0x178] sm:$0xff] %v3427_v6  ;;  %v3425_v57 = vadd.f32 %v3360_v61, %v3179_v31  ;;  %v3184_v53 = vadd.f32 %v4686_v13, %v2986_v1  ;;  %v4720_v8 = vpop.f32.mrf.mxu1  ;;  %v3487_v60 = vadd.f32 %v3486_v42, %v3424_v35  ;;  %v3529_v35 = vmul.f32 %v3427_v6, %v3427_v6  ;;  %v6575_v25 = vld [vmem:[#allocation19_spill] sm:$0xff] }
 0x253   : > { %v3556_v46 = vadd.f32 %v3555_v52, %v3525_v54  ;;  %v3127_v3 = vpop.f32.mrf.mxu0  ;;  %v2990_v59 = vadd.f32 %v6568_v2, %v2744_v30  ;;  %v6573_v54 = vld [vmem:[#allocation34_spill] sm:$0xff]  ;;  %v2091_v30 = vrot.slane %v6575_v25, 4 }
 0x254   : > { %3457 = vst [vmem:[%s5775_s11 + $0x158] sm:$0xff] %v3425_v57  ;;  %v3527_v26 = vmul.f32 %v3425_v57, %v3425_v57  ;;  %v3430_v4 = vadd.f32 %v4720_v8, %v3184_v53  ;;  %v3182_v45 = vadd.f32 %v3127_v3, %v2984_v10  ;;  %v3373_v11 = vpop.f32.mrf.mxu1  ;;  %v3488_v14 = vadd.f32 %v3487_v60, %v3425_v57 }
 0x255   : > { %v3557_v21 = vadd.f32 %v3556_v46, %v3526_v44  ;;  %v4687_v32 = vpop.f32.mrf.mxu0  ;;  %v2991_v52 = vadd.f32 %v6573_v54, %v2745_v47  ;;  %v2092_v40 = vadd.f32 %v2091_v30, %v6575_v25 }
 0x256   : > { %3462 = vst [vmem:[%s5775_s11 + $0x1a8] sm:$0xff] %v3430_v4  ;;  %v3428_v24 = vadd.f32 %v3373_v11, %v3182_v45  ;;  %v3185_v62 = vadd.f32 %v4687_v32, %v2987_v9  ;;  %v4721_v23 = vpop.f32.mrf.mxu1  ;;  %v3489_v28 = vadd.f32 %v3488_v14, %v3426_v22  ;;  %v2743_v22 = vadd.f32 %v6130_v7, %v6572_v18  ;;  %v6576_v14 = vld [vmem:[#allocation20_spill] sm:$0xff] }
 0x257   : > { %v3558_v34 = vadd.f32 %v3557_v21, %v3527_v26  ;;  %v3130_v38 = vpop.f32.mrf.mxu0  ;;  %v3532_v9 = vmul.f32 %v3430_v4, %v3430_v4  ;;  %v2161_v32 = vrot.slane %v6576_v14, 4 }
 0x258   : > { %3460 = vst [vmem:[%s5775_s11 + $0x188] sm:$0xff] %v3428_v24  ;;  %v3431_v15 = vadd.f32 %v4721_v23, %v3185_v62  ;;  %v3183_v58 = vadd.f32 %v3130_v38, %v2985_v49  ;;  %v3376_v20 = vpop.f32.mrf.mxu1  ;;  %v3490_v55 = vadd.f32 %v3489_v28, %v3427_v6  ;;  %v3530_v1 = vmul.f32 %v3428_v24, %v3428_v24 }
 0x259   : > { %v3559_v48 = vadd.f32 %v3558_v34, %v3528_v19  ;;  %v4690_v16 = vpop.f32.mrf.mxu0  ;;  %v2989_v57 = vadd.f32 %v6574_v33, %v2743_v22 }
 0x25a   : > { %3463 = vst [vmem:[%s5775_s11 + $0x1b8] sm:$0xff] %v3431_v15  ;;  %v3429_v12 = vadd.f32 %v3376_v20, %v3183_v58  ;;  %v3188_v39 = vadd.f32 %v4690_v16, %v2990_v59  ;;  %v4724_v41 = vpop.f32.mrf.mxu1  ;;  %v3491_v50 = vadd.f32 %v3490_v55, %v3428_v24  ;;  %v3533_v26 = vmul.f32 %v3431_v15, %v3431_v15 }
 0x25b   : > { %v3560_v31 = vadd.f32 %v3559_v48, %v3529_v35  ;;  %v3143_v61 = vpop.f32.mrf.mxu0 }
 0x25c   : > { %3461 = vst [vmem:[%s5775_s11 + $0x198] sm:$0xff] %v3429_v12  ;;  %v3531_v6 = vmul.f32 %v3429_v12, %v3429_v12  ;;  %v6252_v42 = vadd.f32 %v4724_v41, %v3188_v39  ;;  %v3186_v13 = vadd.f32 %v3143_v61, %v2988_v29  ;;  %v3389_v7 = vpop.f32.mrf.mxu1  ;;  %v3492_v10 = vadd.f32 %v3491_v50, %v3429_v12 }
 0x25d   : > { %v3561_v0 = vadd.f32 %v3560_v31, %v3530_v1  ;;  %v4691_v27 = vpop.f32.mrf.mxu0 }
 0x25e   : > { %3466 = vst [vmem:[%s5775_s11 + $0x1e8] sm:$0xff] %v6252_v42  ;;  %v3432_v53 = vadd.f32 %v3389_v7, %v3186_v13  ;;  %v3189_v8 = vadd.f32 %v4691_v27, %v2991_v52  ;;  %v4725_v43 = vpop.f32.mrf.mxu1  ;;  %v3493_v60 = vadd.f32 %v3492_v10, %v3430_v4 }
 0x25f   : > { %v3562_v44 = vadd.f32 %v3561_v0, %v3531_v6  ;;  %v3146_v46 = vpop.f32.mrf.mxu0 }
 0x260   : > { %3464 = vst [vmem:[%s5775_s11 + $0x1c8] sm:$0xff] %v3432_v53  ;;  %v3435_v3 = vadd.f32 %v4725_v43, %v3189_v8  ;;  %v3187_v5 = vadd.f32 %v3146_v46, %v2989_v57  ;;  %v3494_v11 = vadd.f32 %v3493_v60, %v3431_v15  ;;  %v3392_v21 = vpop.f32.mrf.mxu1  ;;  %v3534_v49 = vmul.f32 %v3432_v53, %v3432_v53 }
 0x261   : > { %v3563_v45 = vadd.f32 %v3562_v44, %v3532_v9 }
 0x262   : > { %3467 = vst [vmem:[%s5775_s11 + $0x1f8] sm:$0xff] %v3435_v3  ;;  %v3433_v4 = vadd.f32 %v3392_v21, %v3187_v5  ;;  %v3495_v36 = vadd.f32 %v3494_v11, %v3432_v53 }
 0x263   : > { %v3564_v17 = vadd.f32 %v3563_v45, %v3533_v26 }
 0x264   : > { %3465 = vst [vmem:[%s5775_s11 + $0x1d8] sm:$0xff] %v3433_v4  ;;  %v3535_v51 = vmul.f32 %v3433_v4, %v3433_v4  ;;  %v3496_v62 = vadd.f32 %v3495_v36, %v3433_v4 }
 0x265   : > { %v3565_v24 = vadd.f32 %v3564_v17, %v3534_v49 }
 0x266   : > { %4798 = shalt.err (!%p4795_p3)
}
 0x267   : > { %s4799_s30 = scalar_lea.hbm %s6264_s24, 8192  ;;  %s4803_s6 = scalar_lea.hbm %s6336_s2, 16384 }
 0x268   : > { %p4800_p4 = scmp.ne.s32.totalorder %s6264_s24, %s4799_s30  ;;  %p4804_p9 = scmp.lt.s32.totalorder %s6264_s24, %s6336_s2 }
 0x269   : > { %p4805_p10 = scmp.lt.s32.totalorder %s4803_s6, %s4799_s30 }
 0x26a   : > { %p4801_p7 = pnand %p4800_p4, %p4939_p5 }
 0x26b   : > { %p4806_p11 = por %p4805_p10, %p4804_p9 }
 0x26c   : > { %p4802_p8 = pneg %p4801_p7 }
 0x26e   : > { %p4807_p12 = pnand %p4806_p11, %p4802_p8 }
 0x270   : > { %4810 = shalt.err (!%p4807_p12)
}
 0x271   : > { %s4878_s11 = smov 256   ;;  %s4879_s9 = smov 16   ;;  %v2162_v23 = vadd.f32 %v2161_v32, %v6576_v14  ;;  %v3536_v19 = vmul.f32 %v6252_v42, %v6252_v42  ;;  %v3497_v28 = vadd.f32 %v3496_v62, %v6252_v42  ;;  %v3566_v34 = vadd.f32 %v3565_v24, %v3535_v51 }
 0x272   : > { %4739 = dma.vmem_to_hbm [thread:$0]  (%p4939_p5), %s6266_s17, 8192, %s6264_s24, %s3579_s25, %s4878_s11, %s4878_s11, %s4879_s9   ;;  %v2093_v38 = vrot.slane %v2092_v40, 2  ;;  %v3537_v2 = vmul.f32 %v3435_v3, %v3435_v3 }
 0x273   : > { %v3498_v59 = vadd.f32 %v3497_v28, %v3435_v3  ;;  %v3567_v37 = vadd.f32 %v3566_v34, %v3536_v19  ;;  %v2163_v15 = vrot.slane %v2162_v23, 2  ;;  %s3709_s17 = sshll.u32 %s5744_s8, 1  ;;  %s4110_s19 = sshll.u32 %s4922_s16, 5 }
 0x274   : > { %v2094_v35 = vadd.f32 %v2093_v38, %v2092_v40  ;;  %s174_s20 = scalar_lea.vmem [#allocation4], %s3709_s17  ;;  %s3611_s27 = scalar_lea.hbm %s6337_s3, %s4110_s19 }
 0x275   : > { %v3499_v63 = vrot.slane %v3498_v59, 4  ;;  %v3568_v47 = vadd.f32 %v3567_v37, %v3537_v2  ;;  %v2164_v16 = vadd.f32 %v2163_v15, %v2162_v23  ;;  %s3613_s24 = sshll.u32 %s174_s20, 4  ;;  %s3584_s28 = scalar_lea.sflag [#allocation5], %s5744_s8  ;;  %s3614_s24 = int_to_ptr.vmem [resolvable:$true] %s3613_s24 }
 0x276   : > { %v2095_v56 = vrot.slane %v2094_v35, 1  ;;  %s4811_s29 = scalar_lea.vmem %s3614_s24, 32  ;;  %s4880_s16 = smov [#allocation4]  }
 0x277   : > { %v3500_v58 = vadd.f32 %v3499_v63, %v3498_v59  ;;  %v3569_v20 = vrot.slane %v3568_v47, 4  ;;  %v2165_v22 = vrot.slane %v2164_v16, 1  ;;  %p4812_p13 = scmp.ne.s32.totalorder %s3614_s24, %s4811_s29  ;;  %s4815_s30 = sshll.u32 %s4880_s16, 4  ;;  %s4816_s30 = int_to_ptr.vmem [resolvable:$false] %s4815_s30 }
 0x278   : > { %v2096_v41 = vadd.f32 %v2095_v56, %v2094_v35  ;;  %s4817_s4 = scalar_lea.vmem %s4816_s30, 64  ;;  %p4818_p2 = scmp.lt.s32.totalorder %s3614_s24, %s4816_s30 }
 0x279   : > { %v3501_v48 = vrot.slane %v3500_v58, 2  ;;  %v3570_v55 = vadd.f32 %v3569_v20, %v3568_v47  ;;  %v2166_v31 = vadd.f32 %v2165_v22, %v2164_v16  ;;  %p4813_p0 = pnand %p4812_p13, %p4939_p5  ;;  %p4819_p3 = scmp.lt.s32.totalorder %s4817_s4, %s4811_s29 }
 0x27b   : > { %v3502_v29 = vadd.f32 %v3501_v48, %v3500_v58  ;;  %v3571_v18 = vrot.slane %v3570_v55, 2  ;;  %p4814_p1 = pneg %p4813_p0  ;;  %p4820_p4 = por %p4819_p3, %p4818_p2 }
 0x27d   : > { %v3503_v12 = vrot.slane %v3502_v29, 1  ;;  %v3572_v39 = vadd.f32 %v3571_v18, %v3570_v55  ;;  %p4821_p7 = pnand %p4820_p4, %p4814_p1 }
 0x27f   : > { %v3504_v50 = vadd.f32 %v3503_v12, %v3502_v29  ;;  %v3573_v1 = vrot.slane %v3572_v39, 1 }
 0x281   : > { %v3505_v61 = vadd.f32 %v3504_v50, %v2096_v41  ;;  %v3574_v54 = vadd.f32 %v3573_v1, %v3572_v39 }
 0x283   : > { %v3575_v52 = vadd.f32 %v3574_v54, %v2166_v31  ;;  %3576 = vst [vmem:[%s174_s20] sm:$0x1] %v3505_v61 }
 0x285   : > { %3577 = vst [vmem:[%s174_s20 + $0x1] sm:$0x1] %v3575_v52 }
 0x286   : > { %4824 = shalt.err (!%p4821_p7)
}
 0x287   : > { %s4825_s5 = scalar_lea.hbm %s3611_s27, 32  ;;  %s4829_s7 = scalar_lea.hbm %s6337_s3, 64 }
 0x288   : > { %p4826_p8 = scmp.ne.s32.totalorder %s3611_s27, %s4825_s5  ;;  %p4830_p11 = scmp.lt.s32.totalorder %s3611_s27, %s6337_s3 }
 0x289   : > { %p4831_p12 = scmp.lt.s32.totalorder %s4829_s7, %s4825_s5 }
 0x28a   : > { %p4827_p9 = pnand %p4826_p8, %p4939_p5 }
 0x28b   : > { %p4832_p13 = por %p4831_p12, %p4830_p11 }
 0x28c   : > { %p4828_p10 = pneg %p4827_p9 }
 0x28e   : > { %p4833_p0 = pnand %p4832_p13, %p4828_p10 }
 0x290   : > { %4836 = shalt.err (!%p4833_p0)
}
 0x291   : > { %4740 = dma.vmem_to_hbm [thread:$0]  (%p4939_p5), %s3614_s24, 32, %s3611_s27, %s3584_s28  }
 0x292 PF: > { %p4750_p1 = scmp.ge.s32.totalorder %s4875_s15, 2  ;;  %s3625_s9 = sand.u32 1, %s4863_s12  }
 0x293   : > { %s3626_s17 = scalar_lea.sflag [#allocation3], %s3625_s9 }
 0x294   : > { %p4744_p2 = pnand %p4750_p1, %p4943_p6 }
 0x296   : > { %p4745_p3 = pneg %p4744_p2 }
 0x298   : > { %4854 = dma.done.wait (%p4745_p3), %s3626_s17, 8192  }
 0x299   : > { %4856 = vsyncadd (%p4745_p3), %s3626_s17, 4294959104  ;;  %s3635_s19 = scalar_lea.sflag [#allocation5], %s3625_s9 }
 0x29a   : > { %4858 = dma.done.wait (%p4745_p3), %s3635_s19, 32  }
 0x29b   : > { %4860 = vsyncadd (%p4745_p3), %s3635_s19, 4294967264  ;;  %p17_p5 = scmp.ge.s32.totalorder %s4926_s18, 4   ;;  %s6577_s12 = smov %s4867_s13 }
 0x29c   : > { %s6578_s13 = smov %s4871_s14  ;;  %s6579_s14 = smov %s4937_s21 }
 0x29d   : > { %s6580_s15 = smov %s4926_s18  ;;  %19 = sbr.rel (!%p17_p5) target bundleno = 5 (0x5), region = 93 }
 0x2a2   :  { %3640 = vsyncpa [#allocation3], 1 }
 0x2a3   :  { %3642 = vsyncpa [#allocation3 + $0x1], 1 }
 0x2a4   :  { %3643 = vsyncpa [#allocation5], 1 }
 0x2a5   :  { %3645 = vsyncpa [#allocation5 + $0x1], 1 }

</bundles_post_ra>
